<compile_context>
chip_gen: v6e
topology: v6e:2x2x1
jax: 0.10.0
libtpu: 0.0.40
codegen_flags: <defaults>
</compile_context>

<pallas_src>
import jax
import jax.numpy as jnp
from jax.experimental import pallas as pl
from jax.experimental.pallas import tpu as pltpu


def _round_up(x, m):
    return (x + m - 1) // m * m


def _pick_group_size(n, cap=8):
    # Largest divisor of n not exceeding cap (group must divide the batch so
    # no zero-padded fake image contaminates the sums: relu(bias) != 0).
    nb = 1
    for d in range(1, min(n, cap) + 1):
        if n % d == 0:
            nb = d
    return nb


# ----------------------------------------------------------------------------
# Fused conv3x3 + ReLU + cosine-partial kernel (one matmul per grid step)
# ----------------------------------------------------------------------------
def _build_loss_w_call(steps, cin, h, w, cout, nb):
    hp, wp = h + 2, w + 2
    ktap = 9 * cin
    l_group = nb * hp * wp                           # flat padded group length
    m_valid = ((nb - 1) * hp + h - 1) * wp + w       # #output positions needed
    mpad = _round_up(m_valid, 128)                   # lane-dense compute width
    lpad = mpad + 2 * wp + 2                         # tap slices end exactly at lpad
    assert lpad >= l_group

    def kernel(xo_ref, xt_ref, w_ref, b_ref, mask_ref, out_ref, patch_ref):
        # xo_ref/xt_ref: (cin, lpad) zero-padded, channel-major flattened group
        # w_ref: (cout, 9*cin) tap-major weights; b_ref: (cout, 1)
        # mask_ref: (1, mpad) precomputed validity mask
        # out_ref: (8, 128) per-step partial-sum block (rows 0/1/2 = ab/aa/bb)
        # patch_ref: VMEM scratch (9*cin, 2*mpad)

        # Assemble the fused-K operand: 9 shifted slices per stream, both
        # streams stacked along the lane (matmul N) dim.
        for t in range(9):
            dh, dw = divmod(t, 3)
            s = dh * wp + dw
            patch_ref[t * cin:(t + 1) * cin, :mpad] = xo_ref[:, s:s + mpad]
            patch_ref[t * cin:(t + 1) * cin, mpad:] = xt_ref[:, s:s + mpad]

        # One MXU matmul: (cout, 9*cin) x (9*cin, 2*mpad).
        feats = jnp.dot(w_ref[...], patch_ref[...],
                        preferred_element_type=jnp.float32)
        feats = jnp.maximum(feats + b_ref[...], 0.0)          # (cout, 2*mpad)

        mask = mask_ref[...]                                  # (1, mpad)
        fo = feats[:, :mpad] * mask
        ft = feats[:, mpad:] * mask

        s_ab = jnp.sum(fo * ft)
        s_aa = jnp.sum(fo * fo)
        s_bb = jnp.sum(ft * ft)

        row = jax.lax.broadcasted_iota(jnp.int32, (8, 128), 0)
        out_ref[...] = jnp.where(
            row == 0, s_ab,
            jnp.where(row == 1, s_aa,
                      jnp.where(row == 2, s_bb, 0.0)))

    img_spec = pl.BlockSpec((None, cin, lpad), lambda i: (i, 0, 0))
    call = pl.pallas_call(
        kernel,
        out_shape=jax.ShapeDtypeStruct((steps * 8, 128), jnp.float32),
        grid=(steps,),
        in_specs=[
            img_spec,                                          # orig groups
            img_spec,                                          # trans groups
            pl.BlockSpec((cout, ktap), lambda i: (0, 0)),      # weights: resident
            pl.BlockSpec((cout, 1), lambda i: (0, 0)),         # bias: resident
            pl.BlockSpec((1, mpad), lambda i: (0, 0)),         # mask: resident
        ],
        out_specs=pl.BlockSpec((8, 128), lambda i: (i, 0)),    # lane-dense, per-step
        scratch_shapes=[pltpu.VMEM((ktap, 2 * mpad), jnp.float32)],
        compiler_params=pltpu.CompilerParams(
            # Each step writes its own output block -> safe to shard across TCs.
            dimension_semantics=("parallel",),
            vmem_limit_bytes=64 * 1024 * 1024,
        ),
    )
    return call, mpad, lpad, m_valid


# ----------------------------------------------------------------------------
# LossW forward (device part)
# ----------------------------------------------------------------------------
@jax.jit
def _loss_w_device(img_trans, img_orig, w_conv, b_conv):
    n, cin, h, w = img_orig.shape
    cout = w_conv.shape[0]
    hp, wp = h + 2, w + 2
    nb = _pick_group_size(n)
    steps = n // nb
    l_group = nb * hp * wp

    call, mpad, lpad, m_valid = _build_loss_w_call(steps, cin, h, w, cout, nb)

    def prep(x):
        # NCHW -> zero-pad H/W by 1 -> groups of nb images stacked along H,
        # channel-major flat layout (steps, cin, nb*hp*wp), lane-padded to lpad.
        xp = jnp.pad(x, ((0, 0), (0, 0), (1, 1), (1, 1)))
        xg = xp.reshape(steps, nb, cin, hp * wp)
        xg = jnp.transpose(xg, (0, 2, 1, 3)).reshape(steps, cin, l_group)
        return jnp.pad(xg, ((0, 0), (0, 0), (0, lpad - l_group)))

    xo = prep(img_orig)
    xt = prep(img_trans)

    # (Cout, Cin, 3, 3) -> (Cout, kh, kw, Cin) -> (Cout, 9*Cin); row = t*cin + c.
    w_taps = jnp.transpose(w_conv, (0, 2, 3, 1)).reshape(cout, 9 * cin)
    b_col = b_conv.reshape(cout, 1)

    # Hoisted validity mask over the mpad compute positions.
    p = jnp.arange(mpad, dtype=jnp.int32)
    valid = (p < m_valid) & ((p // wp) % hp < h) & ((p % wp) < w)
    mask = valid.astype(jnp.float32).reshape(1, mpad)

    parts = call(xo, xt, w_taps, b_col, mask).reshape(steps, 8, 128)
    s_ab = jnp.sum(parts[:, 0, 0])
    s_aa = jnp.sum(parts[:, 1, 0])
    s_bb = jnp.sum(parts[:, 2, 0])

    # eps guards a 0/0 if a feature map is all zero after ReLU (torch would NaN).
    w_cos = s_ab / (jnp.sqrt(s_aa) * jnp.sqrt(s_bb) + 1e-8)
    w_i0_it = jnp.maximum(w_cos - 0.8, 0.0) / 0.2 / 2.0 + 0.5
    loss = jnp.maximum(1.0 - w_i0_it, 0.0)
    return loss, w_cos


def loss_w(img_deip, img_trans, img_orig, img_label, w_conv, b_conv, t=0.01):
    # The PyTorch module also feeds img_deip / img_label through the VGG, but
    # those activations are unused -> dead code under jit, elided here.
    del img_deip, img_label, t
    loss_dev, _ = _loss_w_device(img_trans, img_orig, w_conv, b_conv)
    jax.block_until_ready(loss_dev)
    return float(loss_dev)          # single host sync (module's .item() epilogue)


# ----------------------------------------------------------------------------
# Pure-JAX reference for validation
# ----------------------------------------------------------------------------
def _reference_w(img_trans, img_orig, w_conv, b_conv):
    def feats(x):
        y = jax.lax.conv_general_dilated(
            x, w_conv, window_strides=(1, 1), padding="SAME",
            dimension_numbers=("NCHW", "OIHW", "NCHW"))
        return jnp.maximum(y + b_conv.reshape(1, -1, 1, 1), 0.0)

    fo, ft = feats(img_orig), feats(img_trans)
    na = jnp.sqrt(jnp.sum(fo * fo))
    nb = jnp.sqrt(jnp.sum(ft * ft))
    return jnp.sum(fo * ft) / (na * nb + 1e-8)


if __name__ == "__main__":
    key = jax.random.PRNGKey(0)
    k_imgs, k_w, k_b = jax.random.split(key, 3)

    N, C, H, W = 2, 3, 16, 16
    COUT = 8

    k1, k2, k3, k4 = jax.random.split(k_imgs, 4)
    img_deip = jax.random.uniform(k1, (N, C, H, W), dtype=jnp.float32)
    img_trans = jax.random.uniform(k2, (N, C, H, W), dtype=jnp.float32)
    img_orig = jax.random.uniform(k3, (N, C, H, W), dtype=jnp.float32)
    img_label = jax.random.uniform(k4, (N, C, H, W), dtype=jnp.float32)

    # Deterministic conv proxy parameters (PyTorch layout: Cout, Cin, 3, 3).
    w_conv = 0.05 * jax.random.normal(k_w, (COUT, C, 3, 3), dtype=jnp.float32)
    b_conv = 0.01 * jax.random.normal(k_b, (COUT,), dtype=jnp.float32)

    out = loss_w(img_deip, img_trans, img_orig, img_label, w_conv, b_conv)
    assert isinstance(out, float) and 0.0 <= out <= 1.0

    # Validate the fused kernel's cosine against a pure-JAX reference.
    _, w_cos_dev = _loss_w_device(img_trans, img_orig, w_conv, b_conv)
    w_cos_ref = _reference_w(img_trans, img_orig, w_conv, b_conv)
    jax.block_until_ready((w_cos_dev, w_cos_ref))
    assert abs(float(w_cos_dev) - float(w_cos_ref)) < 1e-4, (
        float(w_cos_dev), float(w_cos_ref))

    print("KERNEL_OK")
</pallas_src>

<mosaic_0001>
module attributes {stable_mosaic.version = 11 : i64} {
  func.func @kernel(%arg0: i32, %arg1: memref<1x3x678xf32, #tpu.memory_space<vmem>>, %arg2: memref<1x3x678xf32, #tpu.memory_space<vmem>>, %arg3: memref<8x27xf32, #tpu.memory_space<vmem>>, %arg4: memref<8x1xf32, #tpu.memory_space<vmem>>, %arg5: memref<1x640xf32, #tpu.memory_space<vmem>>, %arg6: memref<8x128xf32, #tpu.memory_space<vmem>>, %arg7: memref<27x1280xf32, #tpu.memory_space<vmem>>) attributes {dimension_semantics = [#tpu.dimension_semantics<parallel>], iteration_bounds = array<i64: 1>, scalar_prefetch = 0 : i64, scratch_operands = 1 : i64, tpu.core_type = #tpu.core_type<tc>, window_params = [{transform_indices = @transform_0, window_bounds = array<i64: 1, 3, 678>}, {transform_indices = @transform_1, window_bounds = array<i64: 1, 3, 678>}, {pipeline_mode = #tpu.pipeline_mode<synchronous>, transform_indices = @transform_2, window_bounds = array<i64: 8, 27>}, {pipeline_mode = #tpu.pipeline_mode<synchronous>, transform_indices = @transform_3, window_bounds = array<i64: 8, 1>}, {pipeline_mode = #tpu.pipeline_mode<synchronous>, transform_indices = @transform_4, window_bounds = array<i64: 1, 640>}, {transform_indices = @transform_5, window_bounds = array<i64: 8, 128>}]} {
    %c0 = arith.constant 0 : index
    %c0_0 = arith.constant 0 : index
    %c0_1 = arith.constant 0 : index
    %0 = vector.load %arg1[%c0, %c0_0, %c0_1] : memref<1x3x678xf32, #tpu.memory_space<vmem>>, vector<1x3x640xf32>
    %1 = vector.shape_cast %0 : vector<1x3x640xf32> to vector<3x640xf32>
    %c0_2 = arith.constant 0 : index
    %c0_3 = arith.constant 0 : index
    %2 = vector.load %arg7[%c0_2, %c0_3] : memref<27x1280xf32, #tpu.memory_space<vmem>>, vector<3x640xf32>
    tpu.vector_store %arg7[%c0_2, %c0_3], %1 {strides = array<i32>} : memref<27x1280xf32, #tpu.memory_space<vmem>>, vector<3x640xf32>,
    %c0_4 = arith.constant 0 : index
    %c0_5 = arith.constant 0 : index
    %c0_6 = arith.constant 0 : index
    %3 = vector.load %arg2[%c0_4, %c0_5, %c0_6] : memref<1x3x678xf32, #tpu.memory_space<vmem>>, vector<1x3x640xf32>
    %4 = vector.shape_cast %3 : vector<1x3x640xf32> to vector<3x640xf32>
    %c0_7 = arith.constant 0 : index
    %c640 = arith.constant 640 : index
    %5 = vector.load %arg7[%c0_7, %c640] : memref<27x1280xf32, #tpu.memory_space<vmem>>, vector<3x640xf32>
    tpu.vector_store %arg7[%c0_7, %c640], %4 {strides = array<i32>} : memref<27x1280xf32, #tpu.memory_space<vmem>>, vector<3x640xf32>,
    %c0_8 = arith.constant 0 : index
    %c0_9 = arith.constant 0 : index
    %c1 = arith.constant 1 : index
    %6 = vector.load %arg1[%c0_8, %c0_9, %c1] : memref<1x3x678xf32, #tpu.memory_space<vmem>>, vector<1x3x640xf32>
    %7 = vector.shape_cast %6 : vector<1x3x640xf32> to vector<3x640xf32>
    %c3 = arith.constant 3 : index
    %c0_10 = arith.constant 0 : index
    %8 = vector.load %arg7[%c3, %c0_10] : memref<27x1280xf32, #tpu.memory_space<vmem>>, vector<3x640xf32>
    tpu.vector_store %arg7[%c3, %c0_10], %7 {strides = array<i32>} : memref<27x1280xf32, #tpu.memory_space<vmem>>, vector<3x640xf32>,
    %c0_11 = arith.constant 0 : index
    %c0_12 = arith.constant 0 : index
    %c1_13 = arith.constant 1 : index
    %9 = vector.load %arg2[%c0_11, %c0_12, %c1_13] : memref<1x3x678xf32, #tpu.memory_space<vmem>>, vector<1x3x640xf32>
    %10 = vector.shape_cast %9 : vector<1x3x640xf32> to vector<3x640xf32>
    %c3_14 = arith.constant 3 : index
    %c640_15 = arith.constant 640 : index
    %11 = vector.load %arg7[%c3_14, %c640_15] : memref<27x1280xf32, #tpu.memory_space<vmem>>, vector<3x640xf32>
    tpu.vector_store %arg7[%c3_14, %c640_15], %10 {strides = array<i32>} : memref<27x1280xf32, #tpu.memory_space<vmem>>, vector<3x640xf32>,
    %c0_16 = arith.constant 0 : index
    %c0_17 = arith.constant 0 : index
    %c2 = arith.constant 2 : index
    %12 = vector.load %arg1[%c0_16, %c0_17, %c2] : memref<1x3x678xf32, #tpu.memory_space<vmem>>, vector<1x3x640xf32>
    %13 = vector.shape_cast %12 : vector<1x3x640xf32> to vector<3x640xf32>
    %c6 = arith.constant 6 : index
    %c0_18 = arith.constant 0 : index
    %14 = vector.load %arg7[%c6, %c0_18] : memref<27x1280xf32, #tpu.memory_space<vmem>>, vector<3x640xf32>
    tpu.vector_store %arg7[%c6, %c0_18], %13 {strides = array<i32>} : memref<27x1280xf32, #tpu.memory_space<vmem>>, vector<3x640xf32>,
    %c0_19 = arith.constant 0 : index
    %c0_20 = arith.constant 0 : index
    %c2_21 = arith.constant 2 : index
    %15 = vector.load %arg2[%c0_19, %c0_20, %c2_21] : memref<1x3x678xf32, #tpu.memory_space<vmem>>, vector<1x3x640xf32>
    %16 = vector.shape_cast %15 : vector<1x3x640xf32> to vector<3x640xf32>
    %c6_22 = arith.constant 6 : index
    %c640_23 = arith.constant 640 : index
    %17 = vector.load %arg7[%c6_22, %c640_23] : memref<27x1280xf32, #tpu.memory_space<vmem>>, vector<3x640xf32>
    tpu.vector_store %arg7[%c6_22, %c640_23], %16 {strides = array<i32>} : memref<27x1280xf32, #tpu.memory_space<vmem>>, vector<3x640xf32>,
    %c0_24 = arith.constant 0 : index
    %c0_25 = arith.constant 0 : index
    %c18 = arith.constant 18 : index
    %18 = vector.load %arg1[%c0_24, %c0_25, %c18] : memref<1x3x678xf32, #tpu.memory_space<vmem>>, vector<1x3x640xf32>
    %19 = vector.shape_cast %18 : vector<1x3x640xf32> to vector<3x640xf32>
    %c9 = arith.constant 9 : index
    %c0_26 = arith.constant 0 : index
    %20 = vector.load %arg7[%c9, %c0_26] : memref<27x1280xf32, #tpu.memory_space<vmem>>, vector<3x640xf32>
    tpu.vector_store %arg7[%c9, %c0_26], %19 {strides = array<i32>} : memref<27x1280xf32, #tpu.memory_space<vmem>>, vector<3x640xf32>,
    %c0_27 = arith.constant 0 : index
    %c0_28 = arith.constant 0 : index
    %c18_29 = arith.constant 18 : index
    %21 = vector.load %arg2[%c0_27, %c0_28, %c18_29] : memref<1x3x678xf32, #tpu.memory_space<vmem>>, vector<1x3x640xf32>
    %22 = vector.shape_cast %21 : vector<1x3x640xf32> to vector<3x640xf32>
    %c9_30 = arith.constant 9 : index
    %c640_31 = arith.constant 640 : index
    %23 = vector.load %arg7[%c9_30, %c640_31] : memref<27x1280xf32, #tpu.memory_space<vmem>>, vector<3x640xf32>
    tpu.vector_store %arg7[%c9_30, %c640_31], %22 {strides = array<i32>} : memref<27x1280xf32, #tpu.memory_space<vmem>>, vector<3x640xf32>,
    %c0_32 = arith.constant 0 : index
    %c0_33 = arith.constant 0 : index
    %c19 = arith.constant 19 : index
    %24 = vector.load %arg1[%c0_32, %c0_33, %c19] : memref<1x3x678xf32, #tpu.memory_space<vmem>>, vector<1x3x640xf32>
    %25 = vector.shape_cast %24 : vector<1x3x640xf32> to vector<3x640xf32>
    %c12 = arith.constant 12 : index
    %c0_34 = arith.constant 0 : index
    %26 = vector.load %arg7[%c12, %c0_34] : memref<27x1280xf32, #tpu.memory_space<vmem>>, vector<3x640xf32>
    tpu.vector_store %arg7[%c12, %c0_34], %25 {strides = array<i32>} : memref<27x1280xf32, #tpu.memory_space<vmem>>, vector<3x640xf32>,
    %c0_35 = arith.constant 0 : index
    %c0_36 = arith.constant 0 : index
    %c19_37 = arith.constant 19 : index
    %27 = vector.load %arg2[%c0_35, %c0_36, %c19_37] : memref<1x3x678xf32, #tpu.memory_space<vmem>>, vector<1x3x640xf32>
    %28 = vector.shape_cast %27 : vector<1x3x640xf32> to vector<3x640xf32>
    %c12_38 = arith.constant 12 : index
    %c640_39 = arith.constant 640 : index
    %29 = vector.load %arg7[%c12_38, %c640_39] : memref<27x1280xf32, #tpu.memory_space<vmem>>, vector<3x640xf32>
    tpu.vector_store %arg7[%c12_38, %c640_39], %28 {strides = array<i32>} : memref<27x1280xf32, #tpu.memory_space<vmem>>, vector<3x640xf32>,
    %c0_40 = arith.constant 0 : index
    %c0_41 = arith.constant 0 : index
    %c20 = arith.constant 20 : index
    %30 = vector.load %arg1[%c0_40, %c0_41, %c20] : memref<1x3x678xf32, #tpu.memory_space<vmem>>, vector<1x3x640xf32>
    %31 = vector.shape_cast %30 : vector<1x3x640xf32> to vector<3x640xf32>
    %c15 = arith.constant 15 : index
    %c0_42 = arith.constant 0 : index
    %32 = vector.load %arg7[%c15, %c0_42] : memref<27x1280xf32, #tpu.memory_space<vmem>>, vector<3x640xf32>
    tpu.vector_store %arg7[%c15, %c0_42], %31 {strides = array<i32>} : memref<27x1280xf32, #tpu.memory_space<vmem>>, vector<3x640xf32>,
    %c0_43 = arith.constant 0 : index
    %c0_44 = arith.constant 0 : index
    %c20_45 = arith.constant 20 : index
    %33 = vector.load %arg2[%c0_43, %c0_44, %c20_45] : memref<1x3x678xf32, #tpu.memory_space<vmem>>, vector<1x3x640xf32>
    %34 = vector.shape_cast %33 : vector<1x3x640xf32> to vector<3x640xf32>
    %c15_46 = arith.constant 15 : index
    %c640_47 = arith.constant 640 : index
    %35 = vector.load %arg7[%c15_46, %c640_47] : memref<27x1280xf32, #tpu.memory_space<vmem>>, vector<3x640xf32>
    tpu.vector_store %arg7[%c15_46, %c640_47], %34 {strides = array<i32>} : memref<27x1280xf32, #tpu.memory_space<vmem>>, vector<3x640xf32>,
    %c0_48 = arith.constant 0 : index
    %c0_49 = arith.constant 0 : index
    %c36 = arith.constant 36 : index
    %36 = vector.load %arg1[%c0_48, %c0_49, %c36] : memref<1x3x678xf32, #tpu.memory_space<vmem>>, vector<1x3x640xf32>
    %37 = vector.shape_cast %36 : vector<1x3x640xf32> to vector<3x640xf32>
    %c18_50 = arith.constant 18 : index
    %c0_51 = arith.constant 0 : index
    %38 = vector.load %arg7[%c18_50, %c0_51] : memref<27x1280xf32, #tpu.memory_space<vmem>>, vector<3x640xf32>
    tpu.vector_store %arg7[%c18_50, %c0_51], %37 {strides = array<i32>} : memref<27x1280xf32, #tpu.memory_space<vmem>>, vector<3x640xf32>,
    %c0_52 = arith.constant 0 : index
    %c0_53 = arith.constant 0 : index
    %c36_54 = arith.constant 36 : index
    %39 = vector.load %arg2[%c0_52, %c0_53, %c36_54] : memref<1x3x678xf32, #tpu.memory_space<vmem>>, vector<1x3x640xf32>
    %40 = vector.shape_cast %39 : vector<1x3x640xf32> to vector<3x640xf32>
    %c18_55 = arith.constant 18 : index
    %c640_56 = arith.constant 640 : index
    %41 = vector.load %arg7[%c18_55, %c640_56] : memref<27x1280xf32, #tpu.memory_space<vmem>>, vector<3x640xf32>
    tpu.vector_store %arg7[%c18_55, %c640_56], %40 {strides = array<i32>} : memref<27x1280xf32, #tpu.memory_space<vmem>>, vector<3x640xf32>,
    %c0_57 = arith.constant 0 : index
    %c0_58 = arith.constant 0 : index
    %c37 = arith.constant 37 : index
    %42 = vector.load %arg1[%c0_57, %c0_58, %c37] : memref<1x3x678xf32, #tpu.memory_space<vmem>>, vector<1x3x640xf32>
    %43 = vector.shape_cast %42 : vector<1x3x640xf32> to vector<3x640xf32>
    %c21 = arith.constant 21 : index
    %c0_59 = arith.constant 0 : index
    %44 = vector.load %arg7[%c21, %c0_59] : memref<27x1280xf32, #tpu.memory_space<vmem>>, vector<3x640xf32>
    tpu.vector_store %arg7[%c21, %c0_59], %43 {strides = array<i32>} : memref<27x1280xf32, #tpu.memory_space<vmem>>, vector<3x640xf32>,
    %c0_60 = arith.constant 0 : index
    %c0_61 = arith.constant 0 : index
    %c37_62 = arith.constant 37 : index
    %45 = vector.load %arg2[%c0_60, %c0_61, %c37_62] : memref<1x3x678xf32, #tpu.memory_space<vmem>>, vector<1x3x640xf32>
    %46 = vector.shape_cast %45 : vector<1x3x640xf32> to vector<3x640xf32>
    %c21_63 = arith.constant 21 : index
    %c640_64 = arith.constant 640 : index
    %47 = vector.load %arg7[%c21_63, %c640_64] : memref<27x1280xf32, #tpu.memory_space<vmem>>, vector<3x640xf32>
    tpu.vector_store %arg7[%c21_63, %c640_64], %46 {strides = array<i32>} : memref<27x1280xf32, #tpu.memory_space<vmem>>, vector<3x640xf32>,
    %c0_65 = arith.constant 0 : index
    %c0_66 = arith.constant 0 : index
    %c38 = arith.constant 38 : index
    %48 = vector.load %arg1[%c0_65, %c0_66, %c38] : memref<1x3x678xf32, #tpu.memory_space<vmem>>, vector<1x3x640xf32>
    %49 = vector.shape_cast %48 : vector<1x3x640xf32> to vector<3x640xf32>
    %c24 = arith.constant 24 : index
    %c0_67 = arith.constant 0 : index
    %50 = vector.load %arg7[%c24, %c0_67] : memref<27x1280xf32, #tpu.memory_space<vmem>>, vector<3x640xf32>
    tpu.vector_store %arg7[%c24, %c0_67], %49 {strides = array<i32>} : memref<27x1280xf32, #tpu.memory_space<vmem>>, vector<3x640xf32>,
    %c0_68 = arith.constant 0 : index
    %c0_69 = arith.constant 0 : index
    %c38_70 = arith.constant 38 : index
    %51 = vector.load %arg2[%c0_68, %c0_69, %c38_70] : memref<1x3x678xf32, #tpu.memory_space<vmem>>, vector<1x3x640xf32>
    %52 = vector.shape_cast %51 : vector<1x3x640xf32> to vector<3x640xf32>
    %c24_71 = arith.constant 24 : index
    %c640_72 = arith.constant 640 : index
    %53 = vector.load %arg7[%c24_71, %c640_72] : memref<27x1280xf32, #tpu.memory_space<vmem>>, vector<3x640xf32>
    tpu.vector_store %arg7[%c24_71, %c640_72], %52 {strides = array<i32>} : memref<27x1280xf32, #tpu.memory_space<vmem>>, vector<3x640xf32>,
    %c0_73 = arith.constant 0 : index
    %c0_74 = arith.constant 0 : index
    %54 = vector.load %arg3[%c0_73, %c0_74] : memref<8x27xf32, #tpu.memory_space<vmem>>, vector<8x27xf32>
    %c0_75 = arith.constant 0 : index
    %c0_76 = arith.constant 0 : index
    %55 = vector.load %arg7[%c0_75, %c0_76] : memref<27x1280xf32, #tpu.memory_space<vmem>>, vector<27x1280xf32>
    %cst = arith.constant dense<0.000000e+00> : vector<8x1280xf32>
    %56 = tpu.matmul %54, %55, %cst {dimension_numbers = #tpu.dot_dimension_numbers<[1], [0], [0], [1], [0, 0, 1, 1], [], []>} : vector<8x27xf32>, vector<27x1280xf32>, vector<8x1280xf32> -> vector<8x1280xf32>
    %c0_77 = arith.constant 0 : index
    %c0_78 = arith.constant 0 : index
    %57 = vector.load %arg4[%c0_77, %c0_78] : memref<8x1xf32, #tpu.memory_space<vmem>>, vector<8x1xf32>
    %58 = vector.broadcast %57 : vector<8x1xf32> to vector<8x1280xf32>
    %59 = arith.addf %56, %58 : vector<8x1280xf32>
    %cst_79 = arith.constant 0.000000e+00 : f32
    %60 = vector.broadcast %cst_79 : f32 to vector<8x1280xf32>
    %61 = arith.maximumf %59, %60 : vector<8x1280xf32>
    %c0_80 = arith.constant 0 : index
    %c0_81 = arith.constant 0 : index
    %62 = vector.load %arg5[%c0_80, %c0_81] : memref<1x640xf32, #tpu.memory_space<vmem>>, vector<1x640xf32>
    %63 = vector.extract_strided_slice %61 {offsets = [0, 0], sizes = [8, 640], strides = [1, 1]} : vector<8x1280xf32> to vector<8x640xf32>
    %64 = vector.broadcast %62 : vector<1x640xf32> to vector<8x640xf32>
    %65 = arith.mulf %63, %64 : vector<8x640xf32>
    %66 = vector.extract_strided_slice %61 {offsets = [0, 640], sizes = [8, 640], strides = [1, 1]} : vector<8x1280xf32> to vector<8x640xf32>
    %67 = vector.broadcast %62 : vector<1x640xf32> to vector<8x640xf32>
    %68 = arith.mulf %66, %67 : vector<8x640xf32>
    %69 = arith.mulf %65, %68 : vector<8x640xf32>
    %70 = vector.shape_cast %69 : vector<8x640xf32> to vector<1x8x640xf32>
    %cst_82 = arith.constant dense<0.000000e+00> : vector<1xf32>
    %71 = vector.multi_reduction <add>, %70, %cst_82 [1, 2] : vector<1x8x640xf32> to vector<1xf32>
    %72 = vector.shape_cast %71 : vector<1xf32> to vector<1x1x1xf32>
    %73 = vector.extract %72[0, 0, 0] : f32 from vector<1x1x1xf32>
    %74 = arith.mulf %65, %65 : vector<8x640xf32>
    %75 = vector.shape_cast %74 : vector<8x640xf32> to vector<1x8x640xf32>
    %cst_83 = arith.constant dense<0.000000e+00> : vector<1xf32>
    %76 = vector.multi_reduction <add>, %75, %cst_83 [1, 2] : vector<1x8x640xf32> to vector<1xf32>
    %77 = vector.shape_cast %76 : vector<1xf32> to vector<1x1x1xf32>
    %78 = vector.extract %77[0, 0, 0] : f32 from vector<1x1x1xf32>
    %79 = arith.mulf %68, %68 : vector<8x640xf32>
    %80 = vector.shape_cast %79 : vector<8x640xf32> to vector<1x8x640xf32>
    %cst_84 = arith.constant dense<0.000000e+00> : vector<1xf32>
    %81 = vector.multi_reduction <add>, %80, %cst_84 [1, 2] : vector<1x8x640xf32> to vector<1xf32>
    %82 = vector.shape_cast %81 : vector<1xf32> to vector<1x1x1xf32>
    %83 = vector.extract %82[0, 0, 0] : f32 from vector<1x1x1xf32>
    %84 = tpu.iota {dimensions = array<i32: 0>} : vector<8x128xi32>
    %c0_i32 = arith.constant 0 : i32
    %85 = vector.broadcast %c0_i32 : i32 to vector<8x128xi32>
    %86 = arith.cmpi eq, %84, %85 : vector<8x128xi32>
    %c1_i32 = arith.constant 1 : i32
    %87 = vector.broadcast %c1_i32 : i32 to vector<8x128xi32>
    %88 = arith.cmpi eq, %84, %87 : vector<8x128xi32>
    %c2_i32 = arith.constant 2 : i32
    %89 = vector.broadcast %c2_i32 : i32 to vector<8x128xi32>
    %90 = arith.cmpi eq, %84, %89 : vector<8x128xi32>
    %cst_85 = arith.constant 0.000000e+00 : f32
    %91 = vector.broadcast %83 : f32 to vector<8x128xf32>
    %92 = vector.broadcast %cst_85 : f32 to vector<8x128xf32>
    %93 = arith.select %90, %91, %92 : vector<8x128xi1>, vector<8x128xf32>
    %94 = vector.broadcast %78 : f32 to vector<8x128xf32>
    %95 = arith.select %88, %94, %93 : vector<8x128xi1>, vector<8x128xf32>
    %96 = vector.broadcast %73 : f32 to vector<8x128xf32>
    %97 = arith.select %86, %96, %95 : vector<8x128xi1>, vector<8x128xf32>
    %c0_86 = arith.constant 0 : index
    %c0_87 = arith.constant 0 : index
    %98 = vector.load %arg6[%c0_86, %c0_87] : memref<8x128xf32, #tpu.memory_space<vmem>>, vector<8x128xf32>
    tpu.vector_store %arg6[%c0_86, %c0_87], %97 {strides = array<i32>} : memref<8x128xf32, #tpu.memory_space<vmem>>, vector<8x128xf32>,
    return
  }
  func.func @transform_0(%arg0: i32) -> (i32, i32, i32) {
    %c0_i32 = arith.constant 0 : i32
    %c0_i32_0 = arith.constant 0 : i32
    %c0_i32_1 = arith.constant 0 : i32
    return %arg0, %c0_i32, %c0_i32_0 : i32, i32, i32
  }
  func.func @transform_1(%arg0: i32) -> (i32, i32, i32) {
    %c0_i32 = arith.constant 0 : i32
    %c0_i32_0 = arith.constant 0 : i32
    %c0_i32_1 = arith.constant 0 : i32
    return %arg0, %c0_i32, %c0_i32_0 : i32, i32, i32
  }
  func.func @transform_2(%arg0: i32) -> (i32, i32) {
    %c0_i32 = arith.constant 0 : i32
    %c0_i32_0 = arith.constant 0 : i32
    %c0_i32_1 = arith.constant 0 : i32
    return %c0_i32, %c0_i32_0 : i32, i32
  }
  func.func @transform_3(%arg0: i32) -> (i32, i32) {
    %c0_i32 = arith.constant 0 : i32
    %c0_i32_0 = arith.constant 0 : i32
    %c0_i32_1 = arith.constant 0 : i32
    return %c0_i32, %c0_i32_0 : i32, i32
  }
  func.func @transform_4(%arg0: i32) -> (i32, i32) {
    %c0_i32 = arith.constant 0 : i32
    %c0_i32_0 = arith.constant 0 : i32
    %c0_i32_1 = arith.constant 0 : i32
    return %c0_i32, %c0_i32_0 : i32, i32
  }
  func.func @transform_5(%arg0: i32) -> (i32, i32) {
    %c0_i32 = arith.constant 0 : i32
    %c0_i32_0 = arith.constant 0 : i32
    return %arg0, %c0_i32 : i32, i32
  }
}

</mosaic_0001>

<bundles_post_ra>
// kernel: _loss_w_device.1
= control target key start
LH: loop header
LB: loop body
LE: loop exit
PB: predicated region body
PF: predicated region fallthrough
CT: control target
= control target key end

     0   :  { %s1362_s24 = smov 90   ;;  %s1363_s6 = smov 108   ;;  %vm672_vm0 = vcmask 736256   ;;  %vm413_vm1 = vcmask 883712   ;;  %vm508_vm2 = vcmask 752640   ;;  %vm775_vm3 = vcmask 1042432   ;;  %s1996_s0 = inlined_call_operand.vmem [shape: f32[1,3,678], index: 0, kind: input, shape index: {}]   ;;  %s1997_s1 = inlined_call_operand.vmem [shape: f32[1,3,678], index: 1, kind: input, shape index: {}]   ;;  %s1998_s2 = inlined_call_operand.vmem [shape: f32[8,27], index: 2, kind: input, shape index: {}]   ;;  %s1999_s3 = inlined_call_operand.vmem [shape: f32[8,1], index: 3, kind: input, shape index: {}]   ;;  %s2000_s4 = inlined_call_operand.vmem [shape: f32[1,640], index: 4, kind: input, shape index: {}]   ;;  %s2001_s5 = inlined_call_operand.vmem [shape: f32[8,128], index: 5, kind: output, shape index: {}]  }
   0x1   :  { %v1405_v0 = vld [vmem:[%s1996_s0 + $0x8] sm:$0x77]  ;;  %v651_v1 = vld [vmem:[%s1996_s0] sm:$0x77]  ;;  %s1364_s9 = smov 92   ;;  %s1365_s12 = smov 91  }
   0x2   :  { %v386_v2 = vld [vmem:[%s1996_s0] sm:$0x77]  ;;  %664 = vrot.lane.b32.xlu0 %v1405_v0, %s1362_s24  ;;  %660 = vrot.lane.b32.xlu1 %v651_v1, %s1362_s24  ;;  %v657_v3 = vcombine.high %v651_v1, %v651_v1  ;;  %v1422_v6 = vld [vmem:[%s1996_s0 + $0x8] sm:$0x77]  ;;  %s1366_s21 = smov 126   ;;  %s1367_s25 = smov 110   ;;  %v658_v34 = vcombine.high %v1405_v0, %v1405_v0 }
   0x3   :  { %v392_v4 = vcombine.high %v386_v2, %v386_v2  ;;  %v481_v5 = vld [vmem:[%s1996_s0] sm:$0x77]  ;;  %v397_v10 = vrot.slane %v1422_v6, 1  ;;  %v1433_v13 = vld [vmem:[%s1996_s0 + $0x8] sm:$0x77]  ;;  %v395_v18 = vrot.slane %v386_v2, 1  ;;  %v393_v44 = vcombine.high %v1422_v6, %v1422_v6 }
   0x4   :  { %v487_v7 = vcombine.high %v481_v5, %v481_v5  ;;  %v566_v8 = vld [vmem:[%s1996_s0] sm:$0x77]  ;;  %v492_v14 = vrot.slane %v1433_v13, 6  ;;  %v1441_v16 = vld [vmem:[%s1996_s0 + $0x8] sm:$0x77]  ;;  %v490_v20 = vrot.slane %v481_v5, 6  ;;  %v488_v48 = vcombine.high %v1433_v13, %v1433_v13 }
   0x5   :  { %v396_v9 = vrot.slane %v392_v4, 1  ;;  %v572_v12 = vcombine.high %v566_v8, %v566_v8  ;;  %v577_v17 = vrot.slane %v1441_v16, 3  ;;  %v133_v19 = vld [vmem:[%s1996_s0] sm:$0x77]  ;;  %v575_v21 = vrot.slane %v566_v8, 3  ;;  %s1368_s28 = smov 109  }
   0x6   :  { %662 = vrot.lane.b32.xlu0 %v657_v3, %s1362_s24  ;;  %v491_v11 = vrot.slane %v487_v7, 6  ;;  %v139_v22 = vcombine.high %v133_v19, %v133_v19  ;;  %v1454_v23 = vld [vmem:[%s1996_s0 + $0x8] sm:$0x77]  ;;  %v228_v24 = vld [vmem:[%s1996_s0] sm:$0x77]  ;;  %v142_v40 = vrot.slane %v133_v19, 2  ;;  %v573_v52 = vcombine.high %v1441_v16, %v1441_v16 }
   0x7   :  { %403 = vrot.lane.b32.xlu1 %v396_v9, %s1363_s6  ;;  %v576_v15 = vrot.slane %v572_v12, 3  ;;  %v144_v25 = vrot.slane %v1454_v23, 2  ;;  %v234_v27 = vcombine.high %v228_v24, %v228_v24  ;;  %v1465_v28 = vld [vmem:[%s1996_s0 + $0x8] sm:$0x77]  ;;  %v313_v33 = vld [vmem:[%s1996_s0] sm:$0x77]  ;;  %v140_v59 = vcombine.high %v1454_v23, %v1454_v23 }
   0x8   :  { %v143_v26 = vrot.slane %v139_v22, 2  ;;  %v239_v29 = vrot.slane %v1465_v28, 7  ;;  %v1473_v31 = vld [vmem:[%s1996_s0 + $0x8] sm:$0x77]  ;;  %v1489_v35 = vld [vmem:[%s1996_s0 + $0x10] sm:$0x77]  ;;  %v319_v42 = vcombine.low %v313_v33, %v313_v33  ;;  %v235_v63 = vcombine.high %v1465_v28, %v1465_v28 }
   0x9   :  { %v238_v30 = vrot.slane %v234_v27, 7  ;;  %v320_v32 = vcombine.low %v1473_v31, %v1473_v31  ;;  %v48_v36 = vld [vmem:[%s1996_s0] sm:$0x77]  ;;  %v237_v39 = vrot.slane %v228_v24, 7  ;;  %v49_v45 = vld [vmem:[%s1996_s0 + $0x8] sm:$0x77] }
   0xa   :  { %405 = vrot.lane.b32.xlu0 %v397_v10, %s1363_s6  ;;  %v20_v37 = vld [vmem:[%s1996_s0] sm:$0x77]  ;;  %v54_v41 = vcombine.high %v48_v36, %v48_v36  ;;  %s1369_s15 = smov 127   ;;  %v59_v46 = vrot.slane %v49_v45, 5  ;;  %v398_v47 = vrot.slane %v393_v44, 1  ;;  %v493_v51 = vrot.slane %v488_v48, 6 }
   0xb   :  { %498 = vrot.lane.b32.xlu1 %v491_v11, %s1364_s9  ;;  %v25_v38 = vcombine.high %v20_v37, %v20_v37  ;;  %29 = vst [vmem:[#allocation2 + $0xb0] sm:$0x7] %v20_v37  ;;  %v1514_v49 = vld [vmem:[%s1996_s0 + $0x10] sm:$0x77]  ;;  %v578_v55 = vrot.slane %v573_v52, 3  ;;  %v57_v58 = vrot.slane %v48_v36, 5  ;;  %v55_v9 = vcombine.high %v49_v45, %v49_v45 }
   0xc   :  { %v58_v43 = vrot.slane %v54_v41, 5  ;;  %v399_v50 = vrot.slane %v1514_v49, 1  ;;  %v1524_v53 = vld [vmem:[%s1996_s0 + $0x10] sm:$0x77]  ;;  %v145_v61 = vrot.slane %v140_v59, 2  ;;  %v240_v1 = vrot.slane %v235_v63, 7 }
   0xd   :  { %30 = vst [vmem:[#allocation2 + $0xd0] sm:$0x7] %v25_v38  ;;  %v494_v54 = vrot.slane %v1524_v53, 6  ;;  %v1532_v56 = vld [vmem:[%s1996_s0 + $0x10] sm:$0x77]  ;;  %v659_v10 = vcombine.high %v1489_v35, %v1489_v35  ;;  %v60_v11 = vrot.slane %v55_v9, 5 }
   0xe   :  { %500 = vrot.lane.b32.xlu0 %v492_v14, %s1364_s9  ;;  %v579_v57 = vrot.slane %v1532_v56, 3  ;;  %v1542_v60 = vld [vmem:[%s1996_s0 + $0x10] sm:$0x77]  ;;  %v21_v5 = vld [vmem:[%s1996_s0 + $0x8] sm:$0x77]  ;;  %v1370_v14 = vmov 0.0  }
   0xf   :  { %583 = vrot.lane.b32.xlu1 %v576_v15, %s1365_s12  ;;  %v146_v62 = vrot.slane %v1542_v60, 2  ;;  %v1552_v0 = vld [vmem:[%s1996_s0 + $0x10] sm:$0x77]  ;;  %v688_v6 = vld [vmem:[%s1997_s1] sm:$0x77]  ;;  %v26_v7 = vcombine.high %v21_v5, %v21_v5  ;;  %870 = vmatprep.mubr.f32.mxu0 %v1370_v14  ;;  %v141_v45 = vcombine.high %v1542_v60, %v1542_v60  ;;  %vm593_vm4 = vcmask 744448  }
  0x10   :  { %v241_v2 = vrot.slane %v1552_v0, 7  ;;  %v1560_v3 = vld [vmem:[%s1996_s0 + $0x10] sm:$0x77]  ;;  %31 = vst [vmem:[#allocation2 + $0x10] sm:$0x7] %v21_v5  ;;  %v694_v8 = vcombine.high %v688_v6, %v688_v6  ;;  %941 = vmatprep.mubr.f32.mxu1 %v1370_v14  ;;  %vm160_vm5 = vcmask 1031168  }
  0x11   :  { %v321_v4 = vcombine.low %v1560_v3, %v1560_v3  ;;  %32 = vst [vmem:[#allocation2 + $0x48] sm:$0x7] %v26_v7  ;;  %v1582_v12 = vld [vmem:[%s1996_s0 + $0x10] sm:$0x77]  ;;  %v434_v13 = vld [vmem:[%s1997_s1] sm:$0x77] }
  0x12   :  { %585 = vrot.lane.b32.xlu0 %v577_v17, %s1365_s12  ;;  %v61_v15 = vrot.slane %v1582_v12, 5  ;;  %v443_v16 = vrot.slane %v434_v13, 1  ;;  %v440_v17 = vcombine.high %v434_v13, %v434_v13  ;;  %v609_v22 = vld [vmem:[%s1997_s1] sm:$0x77]  ;;  %vm255_vm6 = vcmask 900096  }
  0x13   :  { %401 = vrot.lane.b32.xlu1 %v395_v18, %s1363_s6  ;;  %v524_v18 = vld [vmem:[%s1997_s1] sm:$0x77]  ;;  %v618_v24 = vrot.slane %v609_v22, 3  ;;  %vm334_vm7 = vcmask 891904   ;;  %vm75_vm8 = vcmask 1039360   ;;  %vm771_vm9 = vcmask 220160  }
  0x14   :  { %v444_v19 = vrot.slane %v440_v17, 1  ;;  %v350_v41 = vld [vmem:[%s1997_s1] sm:$0x77]  ;;  %v610_v17 = vld [vmem:[%s1997_s1 + $0x8] sm:$0x77] }
  0x15   :  { %v91_v52 = vld [vmem:[%s1997_s1] sm:$0x77] }
  0x16   :  { %496 = vrot.lane.b32.xlu0 %v490_v20, %s1364_s9  ;;  %v533_v20 = vrot.slane %v524_v18, 6 }
  0x17   :  { %581 = vrot.lane.b32.xlu1 %v575_v21, %s1365_s12  ;;  %v530_v21 = vcombine.high %v524_v18, %v524_v18 }
  0x19   :  { %v534_v23 = vrot.slane %v530_v21, 6  ;;  %v616_v21 = vcombine.high %v610_v17, %v610_v17 }
  0x1a   :  { %150 = vrot.lane.b32.xlu0 %v143_v26, %s1366_s21  ;;  %v394_v26 = vcombine.high %v1514_v49, %v1514_v49  ;;  %v147_v49 = vrot.slane %v141_v45, 2  ;;  %v351_v45 = vld [vmem:[%s1997_s1 + $0x8] sm:$0x77] }
  0x1b   :  { %152 = vrot.lane.b32.xlu1 %v144_v25, %s1366_s21  ;;  %v615_v25 = vcombine.high %v609_v22, %v609_v22  ;;  %v620_v22 = vrot.slane %v610_v17, 3 }
  0x1c   :  { %v400_v28 = vrot.slane %v394_v26, 1  ;;  %v182_v26 = vld [vmem:[%s1997_s1 + $0x8] sm:$0x77] }
  0x1d   :  { %v619_v27 = vrot.slane %v615_v25, 3 }
  0x1e   :  { %245 = vrot.lane.b32.xlu0 %v238_v30, %s1367_s25  ;;  %v574_v30 = vcombine.high %v1532_v56, %v1532_v56 }
  0x1f   :  { %247 = vrot.lane.b32.xlu1 %v239_v29, %s1367_s25  ;;  %v489_v29 = vcombine.high %v1524_v53, %v1524_v53 }
  0x22   :  { %324 = vrot.lane.b32.xlu0 %v313_v33, %s1368_s28  ;;  %v580_v33 = vrot.slane %v574_v30, 3 }
  0x23   :  { %326 = vrot.lane.b32.xlu1 %v320_v32, %s1368_s28  ;;  %v495_v32 = vrot.slane %v489_v29, 6  ;;  %v621_v29 = vrot.slane %v616_v21, 3  ;;  %v611_v21 = vld [vmem:[%s1997_s1 + $0x10] sm:$0x77] }
  0x26   :  { %666 = vrot.lane.b32.xlu0 %v658_v34, %s1362_s24 }
  0x27   :  { %668 = vrot.lane.b32.xlu1 %v1489_v35, %s1362_s24  ;;  %v271_v35 = vld [vmem:[%s1997_s1] sm:$0x77] }
  0x28   :  { %v277_v38 = vcombine.high %v271_v35, %v271_v35 }
  0x2a   :  { %148 = vrot.lane.b32.xlu0 %v142_v40, %s1366_s21  ;;  %v281_v40 = vrot.slane %v277_v38, 7 }
  0x2b   :  { %243 = vrot.lane.b32.xlu1 %v237_v39, %s1367_s25  ;;  %v280_v39 = vrot.slane %v271_v35, 7 }
  0x2e   :  { %322 = vrot.lane.b32.xlu0 %v319_v42, %s1368_s28  ;;  %v356_v42 = vcombine.low %v350_v41, %v350_v41 }
  0x2f   :  { %65 = vrot.lane.b32.xlu1 %v58_v43, %s1369_s15  ;;  %v689_v43 = vld [vmem:[%s1997_s1 + $0x8] sm:$0x77] }
  0x30   :  { %v695_v44 = vcombine.high %v689_v43, %v689_v43 }
  0x32   :  { %67 = vrot.lane.b32.xlu0 %v59_v46, %s1369_s15  ;;  %v236_v46 = vcombine.high %v1552_v0, %v1552_v0 }
  0x33   :  { %407 = vrot.lane.b32.xlu1 %v398_v47, %s1363_s6 }
  0x36   :  { %409 = vrot.lane.b32.xlu0 %v399_v50, %s1363_s6  ;;  %v242_v50 = vrot.slane %v236_v46, 7 }
  0x37   :  { %502 = vrot.lane.b32.xlu1 %v493_v51, %s1364_s9  ;;  %v34_v51 = vld [vmem:[%s1997_s1] sm:$0x77] }
  0x38   :  { %43 = vst [vmem:[#allocation2 + $0x38] sm:$0x7] %v34_v51 }
  0x3a   :  { %504 = vrot.lane.b32.xlu0 %v494_v54, %s1364_s9 }
  0x3b   :  { %587 = vrot.lane.b32.xlu1 %v578_v55, %s1365_s12 }
  0x3e   :  { %589 = vrot.lane.b32.xlu0 %v579_v57, %s1365_s12  ;;  %v100_v57 = vrot.slane %v91_v52, 5 }
  0x3f   :  { %63 = vrot.lane.b32.xlu1 %v57_v58, %s1369_s15  ;;  %v97_v58 = vcombine.high %v91_v52, %v91_v52 }
  0x41   :  { %v101_v63 = vrot.slane %v97_v58, 5 }
  0x42   :  { %154 = vrot.lane.b32.xlu0 %v145_v61, %s1366_s21  ;;  %v435_v61 = vld [vmem:[%s1997_s1 + $0x8] sm:$0x77] }
  0x43   :  { %156 = vrot.lane.b32.xlu1 %v146_v62, %s1366_s21  ;;  %v441_v0 = vcombine.high %v435_v61, %v435_v61 }
  0x45   :  { %v446_v9 = vrot.slane %v441_v0, 1 }
  0x46   :  { %249 = vrot.lane.b32.xlu0 %v240_v1, %s1367_s25  ;;  %v445_v1 = vrot.slane %v435_v61, 1 }
  0x47   :  { %251 = vrot.lane.b32.xlu1 %v241_v2, %s1367_s25  ;;  %v39_v2 = vcombine.high %v34_v51, %v34_v51  ;;  %v35_v51 = vld [vmem:[%s1997_s1 + $0x8] sm:$0x77] }
  0x48   :  { %45 = vst [vmem:[#allocation2 + $0x100] sm:$0x7] %v35_v51 }
  0x49   :  { %44 = vst [vmem:[#allocation2 + $0xf8] sm:$0x7] %v39_v2 }
  0x4a   :  { %328 = vrot.lane.b32.xlu0 %v1473_v31, %s1368_s28  ;;  %v181_v31 = vld [vmem:[%s1997_s1] sm:$0x77] }
  0x4b   :  { %330 = vrot.lane.b32.xlu1 %v321_v4, %s1368_s28  ;;  %v187_v34 = vcombine.high %v181_v31, %v181_v31  ;;  %v190_v36 = vrot.slane %v181_v31, 2 }
  0x4d   :  { %v191_v37 = vrot.slane %v187_v34, 2 }
  0x4e   :  { %697 = vrot.lane.b32.xlu0 %v688_v6, %s1362_s24  ;;  %v525_v6 = vld [vmem:[%s1997_s1 + $0x8] sm:$0x77] }
  0x4f   :  { %699 = vrot.lane.b32.xlu1 %v694_v8, %s1362_s24  ;;  %v535_v13 = vrot.slane %v525_v6, 6 }
  0x52   :  { %670 = vrot.lane.b32.xlu0 %v659_v10, %s1362_s24  ;;  %v531_v10 = vcombine.high %v525_v6, %v525_v6 }
  0x53   :  { %69 = vrot.lane.b32.xlu1 %v60_v11, %s1369_s15  ;;  %v22_v11 = vld [vmem:[%s1996_s0 + $0x10] sm:$0x7] }
  0x54   :  { %33 = vst [vmem:[#allocation2 + $0x120] sm:$0x7] %v22_v11 }
  0x56   :  { %71 = vrot.lane.b32.xlu0 %v61_v15, %s1369_s15 }
  0x57   :  { %449 = vrot.lane.b32.xlu1 %v443_v16, %s1363_s6 }
  0x5a   :  { %451 = vrot.lane.b32.xlu0 %v444_v19, %s1363_s6 }
  0x5b   :  { %539 = vrot.lane.b32.xlu1 %v533_v20, %s1364_s9  ;;  %v536_v20 = vrot.slane %v531_v10, 6 }
  0x5e   :  { %541 = vrot.lane.b32.xlu0 %v534_v23, %s1364_s9  ;;  %v56_v23 = vcombine.high %v1582_v12, %v1582_v12  ;;  %v188_v12 = vcombine.high %v182_v26, %v182_v26 }
  0x5f   :  { %624 = vrot.lane.b32.xlu1 %v618_v24, %s1365_s12 }
  0x60   :  { %v62_v30 = vrot.slane %v56_v23, 5 }
  0x62   :  { %626 = vrot.lane.b32.xlu0 %v619_v27, %s1365_s12 }
  0x63   :  { %411 = vrot.lane.b32.xlu1 %v400_v28, %s1363_s6 }
  0x66   :  { %506 = vrot.lane.b32.xlu0 %v495_v32, %s1364_s9 }
  0x67   :  { %591 = vrot.lane.b32.xlu1 %v580_v33, %s1365_s12  ;;  %v272_v33 = vld [vmem:[%s1997_s1 + $0x8] sm:$0x77] }
  0x68   :  { %v278_v38 = vcombine.high %v272_v33, %v272_v33 }
  0x6a   :  { %196 = vrot.lane.b32.xlu0 %v190_v36, %s1366_s21  ;;  %v192_v36 = vrot.slane %v182_v26, 2  ;;  %v617_v26 = vcombine.high %v611_v21, %v611_v21 }
  0x6b   :  { %198 = vrot.lane.b32.xlu1 %v191_v37, %s1366_s21  ;;  %v193_v37 = vrot.slane %v188_v12, 2 }
  0x6e   :  { %286 = vrot.lane.b32.xlu0 %v280_v39, %s1367_s25 }
  0x6f   :  { %288 = vrot.lane.b32.xlu1 %v281_v40, %s1367_s25 }
  0x72   :  { %359 = vrot.lane.b32.xlu0 %v356_v42, %s1368_s28 }
  0x73   :  { %361 = vrot.lane.b32.xlu1 %v350_v41, %s1368_s28 }
  0x74   :  { %v1636_v47 = vpop.permute.xlu0 %664  ;;  %v661_v48 = vpop.permute.xlu1 %660 }
  0x76   :  { %701 = vrot.lane.b32.xlu0 %v689_v43, %s1362_s24  ;;  %v282_v43 = vrot.slane %v272_v33, 7  ;;  %v623_v33 = vrot.slane %v617_v26, 3 }
  0x77   :  { %703 = vrot.lane.b32.xlu1 %v695_v44, %s1362_s24  ;;  %v283_v44 = vrot.slane %v278_v38, 7 }
  0x78   :  { %v663_v53 = vpop.permute.xlu0 %662 }
  0x79   :  { %v404_v54 = vpop.permute.xlu1 %403  ;;  %v673_v55 = vsel %vm672_vm0, %v661_v48, %v663_v53  ;;  %v674_v56 = vsel %vm672_vm0, %v663_v53, %v1636_v47 }
  0x7a   :  { %683 = vst [vmem:[#allocation2 + $0x50] sm:$0x7] %v673_v55  ;;  %684 = vst [vmem:[#allocation2 + $0xe8] sm:$0x7] %v674_v56  ;;  %158 = vrot.lane.b32.xlu0 %v147_v49, %s1366_s21  ;;  %v92_v55 = vld [vmem:[%s1997_s1 + $0x8] sm:$0x77] }
  0x7b   :  { %253 = vrot.lane.b32.xlu1 %v242_v50, %s1367_s25  ;;  %v357_v50 = vcombine.low %v351_v45, %v351_v45  ;;  %v102_v2 = vrot.slane %v92_v55, 5 }
  0x7c   :  { %v1651_v59 = vpop.permute.xlu0 %405 }
  0x7d   :  { %v499_v60 = vpop.permute.xlu1 %498  ;;  %v415_v62 = vsel %vm413_vm1, %v404_v54, %v1651_v59 }
  0x7e   :  { %425 = vst [vmem:[#allocation2 + $0x90] ss:$100 sps:$4 sm:$0x83] %v415_v62   ;;  %332 = vrot.lane.b32.xlu0 %v1560_v3, %s1368_s28 }
  0x7f   :  { %106 = vrot.lane.b32.xlu1 %v100_v57, %s1369_s15 }
  0x80   :  { %v1661_v4 = vpop.permute.xlu0 %500 }
  0x81   :  { %v584_v5 = vpop.permute.xlu1 %583  ;;  %v510_v7 = vsel %vm508_vm2, %v499_v60, %v1661_v4  ;;  %v756_v8 = vld [vmem:[#allocation2 + $0xe8] sm:$0x7]  ;;  %v755_v3 = vld [vmem:[#allocation2 + $0x50] sm:$0x7] }
  0x82   :  { %520 = vst [vmem:[#allocation2 + $0x90] sm:$0x1c] %v510_v7  ;;  %1278 = vmatprep.subr.msk.mxu0 %vm775_vm3, %v756_v8  ;;  %108 = vrot.lane.b32.xlu0 %v101_v63, %s1369_s15  ;;  %v436_v63 = vld [vmem:[%s1997_s1 + $0x10] sm:$0x77]  ;;  %v40_v7 = vcombine.high %v35_v51, %v35_v51 }
  0x83   :  { %453 = vrot.lane.b32.xlu1 %v445_v1, %s1363_s6  ;;  %1279 = vmatpush1.msk.msra.mxu0 %vm775_vm3, %v755_v3  ;;  %v442_v6 = vcombine.high %v436_v63, %v436_v63 }
  0x84   :  { %v1675_v15 = vpop.permute.xlu0 %585  ;;  %46 = vst [vmem:[#allocation2 + $0x80] sm:$0x7] %v40_v7 }
  0x85   :  { %v402_v16 = vpop.permute.xlu1 %401  ;;  %v595_v18 = vsel %vm593_vm4, %v584_v5, %v1675_v15  ;;  %v448_v17 = vrot.slane %v442_v6, 1 }
  0x86   :  { %v414_v19 = vsel %vm413_vm1, %v402_v16, %v404_v54  ;;  %605 = vst [vmem:[#allocation2 + $0x90] sm:$0xe0] %v595_v18  ;;  %455 = vrot.lane.b32.xlu0 %v446_v9, %s1363_s6  ;;  %v690_v54 = vld [vmem:[%s1997_s1 + $0x10] sm:$0x77]  ;;  %v447_v16 = vrot.slane %v436_v63, 1 }
  0x87   :  { %424 = vst [vmem:[#allocation2 + $0xa8] ss:$148 sps:$4 sm:$0x83] %v414_v19   ;;  %543 = vrot.lane.b32.xlu1 %v535_v13, %s1364_s9  ;;  %v696_v58 = vcombine.high %v690_v54, %v690_v54  ;;  %v526_v9 = vld [vmem:[%s1997_s1 + $0x10] sm:$0x77] }
  0x88   :  { %v497_v24 = vpop.permute.xlu0 %496  ;;  %v532_v18 = vcombine.high %v526_v9, %v526_v9 }
  0x89   :  { %v582_v25 = vpop.permute.xlu1 %581  ;;  %v509_v27 = vsel %vm508_vm2, %v497_v24, %v499_v60  ;;  %v98_v60 = vcombine.high %v92_v55, %v92_v55  ;;  %v537_v24 = vrot.slane %v526_v9, 6 }
  0x8a   :  { %v594_v28 = vsel %vm593_vm4, %v582_v25, %v584_v5  ;;  %519 = vst [vmem:[#allocation2 + $0xa8] sm:$0x1c] %v509_v27  ;;  %545 = vrot.lane.b32.xlu0 %v536_v20, %s1364_s9  ;;  %v538_v25 = vrot.slane %v532_v18, 6 }
  0x8b   :  { %604 = vst [vmem:[#allocation2 + $0xa8] sm:$0xe0] %v594_v28  ;;  %628 = vrot.lane.b32.xlu1 %v620_v22, %s1365_s12  ;;  %v103_v5 = vrot.slane %v98_v60, 5 }
  0x8c   :  { %v151_v32 = vpop.permute.xlu0 %150 }
  0x8d   :  { %v1694_v31 = vpop.permute.xlu1 %152  ;;  %v746_v35 = vld [vmem:[#allocation2 + $0x90] sm:$0xff] }
  0x8e   :  { %v162_v34 = vsel %vm160_vm5, %v151_v32, %v1694_v31  ;;  %832 = vmatprep.subr.mxu0 %v746_v35  ;;  %630 = vrot.lane.b32.xlu0 %v621_v29, %s1365_s12  ;;  %v183_v29 = vld [vmem:[%s1997_s1 + $0x10] sm:$0x77] }
  0x8f   :  { %172 = vst [vmem:[#allocation2 + $0xf0] ss:$-28 sps:$4 sm:$0xc1] %v162_v34   ;;  %73 = vrot.lane.b32.xlu1 %v62_v30, %s1369_s15  ;;  %v189_v34 = vcombine.high %v183_v29, %v183_v29 }
  0x90   :  { %v246_v40 = vpop.permute.xlu0 %245 }
  0x91   :  { %v1703_v39 = vpop.permute.xlu1 %247 }
  0x92   :  { %v257_v41 = vsel %vm255_vm6, %v246_v40, %v1703_v39  ;;  %v745_v42 = vld [vmem:[#allocation2 + $0xa8] sm:$0xff]  ;;  %200 = vrot.lane.b32.xlu0 %v192_v36, %s1366_s21 }
  0x93   :  { %267 = vst [vmem:[#allocation2 + $0xf0] sm:$0xe] %v257_v41  ;;  %833 = vmatpush1.msra.mxu0 %v745_v42  ;;  %202 = vrot.lane.b32.xlu1 %v193_v37, %s1366_s21  ;;  %v273_v37 = vld [vmem:[%s1997_s1 + $0x10] sm:$0x77]  ;;  %v194_v41 = vrot.slane %v183_v29, 2  ;;  %v195_v42 = vrot.slane %v189_v34, 2 }
  0x94   :  { %v325_v48 = vpop.permute.xlu0 %324 }
  0x95   :  { %v1712_v46 = vpop.permute.xlu1 %326 }
  0x96   :  { %v336_v49 = vsel %vm334_vm7, %v325_v48, %v1712_v46  ;;  %290 = vrot.lane.b32.xlu0 %v282_v43, %s1367_s25  ;;  %v279_v43 = vcombine.high %v273_v37, %v273_v37 }
  0x97   :  { %346 = vst [vmem:[#allocation2 + $0xf0] sm:$0x70] %v336_v49  ;;  %292 = vrot.lane.b32.xlu1 %v283_v44, %s1367_s25 }
  0x98   :  { %v667_v53 = vpop.permute.xlu0 %666  ;;  %v285_v51 = vrot.slane %v279_v43, 7 }
  0x99   :  { %v1721_v52 = vpop.permute.xlu1 %668  ;;  %v675_v56 = vsel %vm672_vm0, %v1636_v47, %v667_v53 }
  0x9a   :  { %v676_v57 = vsel %vm672_vm0, %v667_v53, %v1721_v52  ;;  %685 = vst [vmem:[#allocation2 + $0x58] sm:$0x7] %v675_v56  ;;  %363 = vrot.lane.b32.xlu0 %v357_v50, %s1368_s28  ;;  %v36_v50 = vld [vmem:[%s1997_s1 + $0x10] sm:$0x7] }
  0x9b   :  { %686 = vst [vmem:[#allocation2 + $0x78] sm:$0x7] %v676_v57  ;;  %365 = vrot.lane.b32.xlu1 %v351_v45, %s1368_s28  ;;  %v352_v53 = vld [vmem:[%s1997_s1 + $0x10] sm:$0x77]  ;;  %47 = vst [vmem:[#allocation2 + $0x108] sm:$0x7] %v36_v50 }
  0x9c   :  { %v149_v62 = vpop.permute.xlu0 %148  ;;  %v93_v56 = vld [vmem:[%s1997_s1 + $0x10] sm:$0x77]  ;;  %v358_v60 = vcombine.low %v352_v53, %v352_v53 }
  0x9d   :  { %v244_v61 = vpop.permute.xlu1 %243  ;;  %v161_v47 = vsel %vm160_vm5, %v149_v62, %v151_v32  ;;  %v622_v32 = vrot.slane %v611_v21, 3 }
  0x9e   :  { %v256_v0 = vsel %vm255_vm6, %v244_v61, %v246_v40  ;;  %v736_v1 = vld [vmem:[#allocation2 + $0xf0] sm:$0xff]  ;;  %171 = vst [vmem:[#allocation2 + $0x138] ss:$-132 sps:$4 sm:$0xc1] %v161_v47   ;;  %705 = vrot.lane.b32.xlu0 %v690_v54, %s1362_s24  ;;  %v99_v61 = vcombine.high %v93_v56, %v93_v56 }
  0x9f   :  { %266 = vst [vmem:[#allocation2 + $0x138] sm:$0xe] %v256_v0  ;;  %834 = vmatprep.subr.mxu0 %v736_v1  ;;  %707 = vrot.lane.b32.xlu1 %v696_v58, %s1362_s24 }
  0xa0   :  { %v323_v8 = vpop.permute.xlu0 %322  ;;  %v105_v6 = vrot.slane %v99_v61, 5 }
  0xa1   :  { %v66_v3 = vpop.permute.xlu1 %65  ;;  %v335_v10 = vsel %vm334_vm7, %v323_v8, %v325_v48  ;;  %v757_v13 = vld [vmem:[#allocation2 + $0x58] sm:$0x7] }
  0xa2   :  { %v758_v11 = vld [vmem:[#allocation2 + $0x78] sm:$0x7]  ;;  %345 = vst [vmem:[#allocation2 + $0x138] sm:$0x70] %v335_v10  ;;  %110 = vrot.lane.b32.xlu0 %v102_v2, %s1369_s15  ;;  %v1816_v2 = vld [vmem:[%s1998_s2] sm:$0xff]  ;;  %v1371_v10 = vmov 0  }
  0xa3   :  { %1281 = vmatprep.subr.msk.mxu1 %vm775_vm3, %v758_v11  ;;  %112 = vrot.lane.b32.xlu1 %v103_v5, %s1369_s15  ;;  %v104_v5 = vrot.slane %v93_v56, 5  ;;  %v765_v11 = vld [vmem:[%s1999_s3] sm:$0xff] }
  0xa4   :  { %1282 = vmatpush1.msk.msra.mxu1 %vm775_vm3, %v757_v13  ;;  %v1750_v19 = vpop.permute.xlu0 %67  ;;  %1309 = vset.pattern.permute.xlu0 %v1371_v10 }
  0xa5   :  { %v408_v20 = vpop.permute.xlu1 %407  ;;  %v77_v22 = vsel %vm75_vm8, %v66_v3, %v1750_v19 }
  0xa6   :  { %v416_v23 = vsel %vm413_vm1, %v1651_v59, %v408_v20  ;;  %87 = vst [vmem:[#allocation2 + $0xd0] sm:$0x38] %v77_v22  ;;  %457 = vrot.lane.b32.xlu0 %v447_v16, %s1363_s6 }
  0xa7   :  { %426 = vst [vmem:[#allocation2 + $0xe0] ss:$-196 sps:$4 sm:$0x83] %v416_v23   ;;  %459 = vrot.lane.b32.xlu1 %v448_v17, %s1363_s6 }
  0xa8   :  { %v1761_v27 = vpop.permute.xlu0 %409 }
  0xa9   :  { %v503_v28 = vpop.permute.xlu1 %502  ;;  %v417_v30 = vsel %vm413_vm1, %v408_v20, %v1761_v27  ;;  %v735_v12 = vld [vmem:[#allocation2 + $0x138] sm:$0xff] }
  0xaa   :  { %v511_v59 = vsel %vm508_vm2, %v1661_v4, %v503_v28  ;;  %427 = vst [vmem:[#allocation2 + $0x88] ss:$68 sps:$4 sm:$0x83] %v417_v30   ;;  %835 = vmatpush1.msra.mxu0 %v735_v12  ;;  %547 = vrot.lane.b32.xlu0 %v537_v24, %s1364_s9 }
  0xab   :  { %521 = vst [vmem:[#allocation2 + $0xe0] sm:$0x1c] %v511_v59  ;;  %549 = vrot.lane.b32.xlu1 %v538_v25, %s1364_s9 }
  0xac   :  { %v1772_v35 = vpop.permute.xlu0 %504 }
  0xad   :  { %v588_v36 = vpop.permute.xlu1 %587  ;;  %v512_v4 = vsel %vm508_vm2, %v503_v28, %v1772_v35  ;;  %v726_v40 = vld [vmem:[#allocation2 + $0xd0] sm:$0xff] }
  0xae   :  { %v596_v38 = vsel %vm593_vm4, %v1675_v15, %v588_v36  ;;  %522 = vst [vmem:[#allocation2 + $0x88] sm:$0x1c] %v512_v4  ;;  %632 = vrot.lane.b32.xlu0 %v622_v32, %s1365_s12  ;;  %836 = vmatprep.subr.mxu0 %v726_v40  ;;  %v284_v15 = vrot.slane %v273_v37, 7 }
  0xaf   :  { %606 = vst [vmem:[#allocation2 + $0xe0] sm:$0xe0] %v596_v38  ;;  %634 = vrot.lane.b32.xlu1 %v623_v33, %s1365_s12 }
  0xb0   :  { %v1783_v44 = vpop.permute.xlu0 %589 }
  0xb1   :  { %v64_v45 = vpop.permute.xlu1 %63  ;;  %v597_v48 = vsel %vm593_vm4, %v588_v36, %v1783_v44 }
  0xb2   :  { %v76_v49 = vsel %vm75_vm8, %v64_v45, %v66_v3  ;;  %607 = vst [vmem:[#allocation2 + $0x88] sm:$0xe0] %v597_v48  ;;  %204 = vrot.lane.b32.xlu0 %v194_v41, %s1366_s21 }
  0xb3   :  { %86 = vst [vmem:[#allocation2 + $0xb0] sm:$0x38] %v76_v49  ;;  %206 = vrot.lane.b32.xlu1 %v195_v42, %s1366_s21 }
  0xb4   :  { %v155_v54 = vpop.permute.xlu0 %154 }
  0xb5   :  { %v1796_v55 = vpop.permute.xlu1 %156  ;;  %v163_v57 = vsel %vm160_vm5, %v1694_v31, %v155_v54 }
  0xb6   :  { %v164_v58 = vsel %vm160_vm5, %v155_v54, %v1796_v55  ;;  %173 = vst [vmem:[#allocation2 + $0x18] ss:$-4 sps:$4 sm:$0xc1] %v163_v57   ;;  %294 = vrot.lane.b32.xlu0 %v284_v15, %s1367_s25 }
  0xb7   :  { %174 = vst [vmem:[#allocation2 + $0xc8] ss:$-124 sps:$4 sm:$0xc1] %v164_v58   ;;  %296 = vrot.lane.b32.xlu1 %v285_v51, %s1367_s25 }
  0xb8   :  { %v250_v62 = vpop.permute.xlu0 %249 }
  0xb9   :  { %v1807_v63 = vpop.permute.xlu1 %251  ;;  %v258_v0 = vsel %vm255_vm6, %v1703_v39, %v250_v62  ;;  %v748_v1 = vld [vmem:[#allocation2 + $0x88] sm:$0xff]  ;;  %v747_v39 = vld [vmem:[#allocation2 + $0xe0] sm:$0xff] }
  0xba   :  { %v259_v31 = vsel %vm255_vm6, %v250_v62, %v1807_v63  ;;  %v725_v47 = vld [vmem:[#allocation2 + $0xb0] sm:$0xff]  ;;  %268 = vst [vmem:[#allocation2 + $0x18] sm:$0xe] %v258_v0  ;;  %367 = vrot.lane.b32.xlu0 %v358_v60, %s1368_s28  ;;  %903 = vmatprep.subr.mxu1 %v748_v1 }
  0xbb   :  { %269 = vst [vmem:[#allocation2 + $0xc8] sm:$0xe] %v259_v31  ;;  %837 = vmatpush1.msra.mxu0 %v725_v47  ;;  %369 = vrot.lane.b32.xlu1 %v352_v53, %s1368_s28 }
  0xbc   :  { %904 = vmatpush1.msra.mxu1 %v747_v39  ;;  %v329_v7 = vpop.permute.xlu0 %328  ;;  %1280 = vmatmul.mubr.msk.f32.vlgmr.msra.gmra.mxu0 %vm771_vm9, %v1816_v2 }
  0xbd   :  { %v1820_v8 = vpop.permute.xlu1 %330  ;;  %v337_v3 = vsel %vm334_vm7, %v1712_v46, %v329_v7  ;;  %1012 = vmatprep.mubr.f32.mxu0 %v1370_v14 }
  0xbe   :  { %v338_v9 = vsel %vm334_vm7, %v329_v7, %v1820_v8  ;;  %347 = vst [vmem:[#allocation2 + $0x18] sm:$0x70] %v337_v3  ;;  %114 = vrot.lane.b32.xlu0 %v104_v5, %s1369_s15 }
  0xbf   :  { %348 = vst [vmem:[#allocation2 + $0xc8] sm:$0x70] %v338_v9  ;;  %116 = vrot.lane.b32.xlu1 %v105_v6, %s1369_s15 }
  0xc0   :  { %v698_v13 = vpop.permute.xlu0 %697 }
  0xc1   :  { %v1834_v16 = vpop.permute.xlu1 %699 }
  0xc2   :  { %v709_v46 = vsel %vm672_vm0, %v698_v13, %v1834_v16  ;;  %768 = vperm.xlu0 %1309, %v765_v11  }
  0xc3   :  { %719 = vst [vmem:[#allocation2 + $0x40] sm:$0x7] %v709_v46 }
  0xc4   :  { %v671_v17 = vpop.permute.xlu0 %670 }
  0xc5   :  { %v70_v18 = vpop.permute.xlu1 %69  ;;  %v677_v20 = vsel %vm672_vm0, %v1721_v52, %v671_v17  ;;  %v737_v23 = vld [vmem:[#allocation2 + $0x18] sm:$0xff] }
  0xc6   :  { %v78_v21 = vsel %vm75_vm8, %v1750_v19, %v70_v18  ;;  %v738_v22 = vld [vmem:[#allocation2 + $0xc8] sm:$0xff]  ;;  %687 = vst [vmem:[#allocation2 + $0x30] sm:$0x7] %v677_v20 }
  0xc7   :  { %88 = vst [vmem:[#allocation2 + $0x10] sm:$0x38] %v78_v21  ;;  %905 = vmatprep.subr.mxu1 %v738_v22 }
  0xc8   :  { %906 = vmatpush1.msra.mxu1 %v737_v23  ;;  %v1842_v24 = vpop.permute.xlu0 %71 }
  0xc9   :  { %v450_v25 = vpop.permute.xlu1 %449  ;;  %v79_v26 = vsel %vm75_vm8, %v70_v18, %v1842_v24 }
  0xca   :  { %v760_v28 = vld [vmem:[#allocation2 + $0x40] sm:$0x7]  ;;  %89 = vst [vmem:[#allocation2 + $0x48] sm:$0x38] %v79_v26 }
  0xcb   :  { %1284 = vmatprep.subr.msk.mxu0 %vm775_vm3, %v760_v28 }
  0xcc   :  { %v1847_v52 = vpop.permute.xlu0 %451 }
  0xcd   :  { %v540_v29 = vpop.permute.xlu1 %539  ;;  %v461_v19 = vsel %vm413_vm1, %v450_v25, %v1847_v52  ;;  %v759_v30 = vld [vmem:[#allocation2 + $0x30] sm:$0x7] }
  0xce   :  { %471 = vst [vmem:[#allocation2 + $0x118] ss:$-244 sps:$4 sm:$0x83] %v461_v19   ;;  %1285 = vmatpush1.msk.msra.mxu0 %vm775_vm3, %v759_v30  ;;  %v727_v34 = vld [vmem:[#allocation2 + $0x10] sm:$0xff] }
  0xd0   :  { %v1852_v59 = vpop.permute.xlu0 %541 }
  0xd1   :  { %v625_v12 = vpop.permute.xlu1 %624  ;;  %v551_v32 = vsel %vm508_vm2, %v540_v29, %v1852_v59  ;;  %v728_v33 = vld [vmem:[#allocation2 + $0x48] sm:$0xff] }
  0xd2   :  { %561 = vst [vmem:[#allocation2 + $0x118] sm:$0x1c] %v551_v32  ;;  %907 = vmatprep.subr.mxu1 %v728_v33 }
  0xd3   :  { %908 = vmatpush1.msra.mxu1 %v727_v34 }
  0xd4   :  { %v1856_v36 = vpop.permute.xlu0 %626  ;;  %1283 = vmatmul.mubr.msk.f32.vlgmr.msra.gmra.mxu1 %vm771_vm9, %v1816_v2 }
  0xd5   :  { %v412_v37 = vpop.permute.xlu1 %411  ;;  %v636_v4 = vsel %vm593_vm4, %v625_v12, %v1856_v36  ;;  %1083 = vmatprep.mubr.f32.mxu1 %v1370_v14 }
  0xd6   :  { %v418_v38 = vsel %vm413_vm1, %v1761_v27, %v412_v37  ;;  %646 = vst [vmem:[#allocation2 + $0x118] sm:$0xe0] %v636_v4 }
  0xd7   :  { %428 = vst [vmem:[#allocation2 + $0xc0] ss:$-76 sps:$4 sm:$0x83] %v418_v38  }
  0xd8   :  { %v507_v40 = vpop.permute.xlu0 %506 }
  0xd9   :  { %v592_v41 = vpop.permute.xlu1 %591  ;;  %v513_v42 = vsel %vm508_vm2, %v1772_v35, %v507_v40 }
  0xda   :  { %v598_v43 = vsel %vm593_vm4, %v1783_v44, %v592_v41  ;;  %523 = vst [vmem:[#allocation2 + $0xc0] sm:$0x1c] %v513_v42 }
  0xdb   :  { %608 = vst [vmem:[#allocation2 + $0xc0] sm:$0xe0] %v598_v43 }
  0xdc   :  { %v197_v45 = vpop.permute.xlu0 %196 }
  0xdd   :  { %v1869_v48 = vpop.permute.xlu1 %198  ;;  %v750_v49 = vld [vmem:[#allocation2 + $0x118] sm:$0xff] }
  0xde   :  { %v208_v27 = vsel %vm160_vm5, %v197_v45, %v1869_v48  ;;  %974 = vmatprep.subr.mxu0 %v750_v49 }
  0xdf   :  { %218 = vst [vmem:[#allocation2 + $0x20] ss:$28 sps:$4 sm:$0xc1] %v208_v27  }
  0xe0   :  { %v287_v15 = vpop.permute.xlu0 %286 }
  0xe1   :  { %v1873_v50 = vpop.permute.xlu1 %288 }
  0xe2   :  { %v298_v35 = vsel %vm255_vm6, %v287_v15, %v1873_v50  ;;  %v749_v51 = vld [vmem:[#allocation2 + $0xc0] sm:$0xff] }
  0xe3   :  { %308 = vst [vmem:[#allocation2 + $0x20] sm:$0xe] %v298_v35  ;;  %975 = vmatpush1.msra.mxu0 %v749_v51 }
  0xe4   :  { %v360_v44 = vpop.permute.xlu0 %359 }
  0xe5   :  { %v1877_v53 = vpop.permute.xlu1 %361 }
  0xe6   :  { %v371_v54 = vsel %vm334_vm7, %v360_v44, %v1877_v53 }
  0xe7   :  { %381 = vst [vmem:[#allocation2 + $0x20] sm:$0x70] %v371_v54 }
  0xe8   :  { %v702_v56 = vpop.permute.xlu0 %701 }
  0xe9   :  { %v1881_v57 = vpop.permute.xlu1 %703  ;;  %v710_v58 = vsel %vm672_vm0, %v1834_v16, %v702_v56 }
  0xea   :  { %v711_v60 = vsel %vm672_vm0, %v702_v56, %v1881_v57  ;;  %720 = vst [vmem:[#allocation2 + $0x28] sm:$0x7] %v710_v58 }
  0xeb   :  { %721 = vst [vmem:[#allocation2] sm:$0x7] %v711_v60 }
  0xec   :  { %v159_v61 = vpop.permute.xlu0 %158 }
  0xed   :  { %v254_v62 = vpop.permute.xlu1 %253  ;;  %v165_v0 = vsel %vm160_vm5, %v1796_v55, %v159_v61 }
  0xee   :  { %v260_v31 = vsel %vm255_vm6, %v1807_v63, %v254_v62  ;;  %v740_v47 = vld [vmem:[#allocation2 + $0x20] sm:$0xff]  ;;  %175 = vst [vmem:[#allocation2 + $0x70] ss:$180 sps:$4 sm:$0xc1] %v165_v0  }
  0xef   :  { %270 = vst [vmem:[#allocation2 + $0x70] sm:$0xe] %v260_v31  ;;  %976 = vmatprep.subr.mxu0 %v740_v47 }
  0xf0   :  { %v333_v1 = vpop.permute.xlu0 %332 }
  0xf1   :  { %v107_v5 = vpop.permute.xlu1 %106  ;;  %v339_v39 = vsel %vm334_vm7, %v1820_v8, %v333_v1  ;;  %v761_v7 = vld [vmem:[#allocation2 + $0x28] sm:$0x7] }
  0xf2   :  { %v762_v6 = vld [vmem:[#allocation2] sm:$0x7]  ;;  %349 = vst [vmem:[#allocation2 + $0x70] sm:$0x70] %v339_v39 }
  0xf3   :  { %1287 = vmatprep.subr.msk.mxu1 %vm775_vm3, %v762_v6 }
  0xf4   :  { %1288 = vmatpush1.msk.msra.mxu1 %vm775_vm3, %v761_v7  ;;  %v109_v55 = vpop.permute.xlu0 %108 }
  0xf5   :  { %v118_v3 = vsel %vm75_vm8, %v107_v5, %v109_v55  ;;  %v454_v63 = vpop.permute.xlu1 %453 }
  0xf6   :  { %128 = vst [vmem:[#allocation2 + $0x38] sm:$0x38] %v118_v3  ;;  %v462_v9 = vsel %vm413_vm1, %v1847_v52, %v454_v63 }
  0xf7   :  { %472 = vst [vmem:[#allocation2 + $0xd8] ss:$84 sps:$4 sm:$0x83] %v462_v9  }
  0xf8   :  { %v1898_v10 = vpop.permute.xlu0 %455 }
  0xf9   :  { %v463_v8 = vsel %vm413_vm1, %v454_v63, %v1898_v10  ;;  %v544_v11 = vpop.permute.xlu1 %543  ;;  %v739_v13 = vld [vmem:[#allocation2 + $0x70] sm:$0xff] }
  0xfa   :  { %473 = vst [vmem:[#allocation2 + $0xa0] ss:$116 sps:$4 sm:$0x83] %v463_v8   ;;  %v552_v16 = vsel %vm508_vm2, %v1852_v59, %v544_v11  ;;  %977 = vmatpush1.msra.mxu0 %v739_v13 }
  0xfb   :  { %562 = vst [vmem:[#allocation2 + $0xd8] sm:$0x1c] %v552_v16 }
  0xfc   :  { %v1904_v46 = vpop.permute.xlu0 %545 }
  0xfd   :  { %v553_v17 = vsel %vm508_vm2, %v544_v11, %v1904_v46  ;;  %v629_v18 = vpop.permute.xlu1 %628  ;;  %v730_v20 = vld [vmem:[#allocation2 + $0x38] sm:$0xff] }
  0xfe   :  { %563 = vst [vmem:[#allocation2 + $0xa0] sm:$0x1c] %v553_v17  ;;  %v637_v21 = vsel %vm593_vm4, %v1856_v36, %v629_v18  ;;  %978 = vmatprep.subr.mxu0 %v730_v20 }
  0xff   :  { %647 = vst [vmem:[#allocation2 + $0xd8] sm:$0xe0] %v637_v21 }
 0x100   :  { %v1910_v22 = vpop.permute.xlu0 %630 }
 0x101   :  { %v638_v23 = vsel %vm593_vm4, %v629_v18, %v1910_v22  ;;  %v74_v25 = vpop.permute.xlu1 %73 }
 0x102   :  { %648 = vst [vmem:[#allocation2 + $0xa0] sm:$0xe0] %v638_v23  ;;  %v80_v26 = vsel %vm75_vm8, %v1842_v24, %v74_v25 }
 0x103   :  { %90 = vst [vmem:[#allocation2 + $0x120] sm:$0x38] %v80_v26 }
 0x104   :  { %v201_v28 = vpop.permute.xlu0 %200 }
 0x105   :  { %v209_v52 = vsel %vm160_vm5, %v1869_v48, %v201_v28  ;;  %v1918_v29 = vpop.permute.xlu1 %202 }
 0x106   :  { %219 = vst [vmem:[#allocation2 + $0x128] ss:$-44 sps:$4 sm:$0xc1] %v209_v52   ;;  %v210_v19 = vsel %vm160_vm5, %v201_v28, %v1918_v29  ;;  %v751_v34 = vld [vmem:[#allocation2 + $0xd8] sm:$0xff]  ;;  %v1173_v28 = vlaneseq }
 0x107   :  { %220 = vst [vmem:[#allocation2 + $0x110] ss:$-12 sps:$4 sm:$0xc1] %v210_v19  }
 0x108   :  { %v291_v30 = vpop.permute.xlu0 %290 }
 0x109   :  { %v299_v59 = vsel %vm255_vm6, %v1873_v50, %v291_v30  ;;  %v1924_v12 = vpop.permute.xlu1 %292  ;;  %v752_v32 = vld [vmem:[#allocation2 + $0xa0] sm:$0xff] }
 0x10a   :  { %309 = vst [vmem:[#allocation2 + $0x128] sm:$0xe] %v299_v59  ;;  %v300_v24 = vsel %vm255_vm6, %v291_v30, %v1924_v12  ;;  %v729_v33 = vld [vmem:[#allocation2 + $0x120] sm:$0xff]  ;;  %1045 = vmatprep.subr.mxu1 %v752_v32 }
 0x10b   :  { %310 = vst [vmem:[#allocation2 + $0x110] sm:$0xe] %v300_v24  ;;  %979 = vmatpush1.msra.mxu0 %v729_v33  ;;  %1046 = vmatpush1.msra.mxu1 %v751_v34  ;;  %v1171_v32 = vld [vmem:[%s2000_s4] sm:$0x1f] }
 0x10c   :  { %v364_v36 = vpop.permute.xlu0 %363  ;;  %1286 = vmatmul.mubr.msk.f32.vlgmr.msra.gmra.mxu0 %vm771_vm9, %v1816_v2 }
 0x10d   :  { %v372_v37 = vsel %vm334_vm7, %v1877_v53, %v364_v36  ;;  %v1932_v4 = vpop.permute.xlu1 %365  ;;  %1154 = vmatprep.mubr.f32.mxu0 %v1370_v14 }
 0x10e   :  { %382 = vst [vmem:[#allocation2 + $0x128] sm:$0x70] %v372_v37  ;;  %v373_v38 = vsel %vm334_vm7, %v364_v36, %v1932_v4 }
 0x10f   :  { %383 = vst [vmem:[#allocation2 + $0x110] sm:$0x70] %v373_v38 }
 0x110   :  { %v706_v40 = vpop.permute.xlu0 %705 }
 0x111   :  { %v712_v41 = vsel %vm672_vm0, %v1881_v57, %v706_v40  ;;  %v708_v42 = vpop.permute.xlu1 %707 }
 0x112   :  { %722 = vst [vmem:[#allocation2 + $0xb8] sm:$0x7] %v712_v41  ;;  %v713_v43 = vsel %vm672_vm0, %v706_v40, %v708_v42 }
 0x113   :  { %723 = vst [vmem:[#allocation2 + $0x60] sm:$0x7] %v713_v43 }
 0x114   :  { %v111_v45 = vpop.permute.xlu0 %110 }
 0x115   :  { %v119_v48 = vsel %vm75_vm8, %v109_v55, %v111_v45  ;;  %v113_v27 = vpop.permute.xlu1 %112  ;;  %v741_v49 = vld [vmem:[#allocation2 + $0x128] sm:$0xff] }
 0x116   :  { %129 = vst [vmem:[#allocation2 + $0xf8] sm:$0x38] %v119_v48  ;;  %v120_v14 = vsel %vm75_vm8, %v111_v45, %v113_v27  ;;  %v742_v15 = vld [vmem:[#allocation2 + $0x110] sm:$0xff] }
 0x117   :  { %130 = vst [vmem:[#allocation2 + $0x100] sm:$0x38] %v120_v14  ;;  %1047 = vmatprep.subr.mxu1 %v742_v15 }
 0x118   :  { %1048 = vmatpush1.msra.mxu1 %v741_v49  ;;  %v458_v50 = vpop.permute.xlu0 %457 }
 0x119   :  { %v464_v35 = vsel %vm413_vm1, %v1898_v10, %v458_v50  ;;  %v460_v51 = vpop.permute.xlu1 %459  ;;  %v763_v44 = vld [vmem:[#allocation2 + $0xb8] sm:$0x7] }
 0x11a   :  { %474 = vst [vmem:[#allocation2 + $0x68] ss:$-92 sps:$4 sm:$0x83] %v464_v35   ;;  %v465_v53 = vsel %vm413_vm1, %v458_v50, %v460_v51  ;;  %v764_v54 = vld [vmem:[#allocation2 + $0x60] sm:$0x7] }
 0x11b   :  { %475 = vst [vmem:[#allocation2 + $0x130] ss:$-148 sps:$4 sm:$0x83] %v465_v53   ;;  %1290 = vmatprep.subr.msk.mxu0 %vm775_vm3, %v764_v54 }
 0x11c   :  { %1291 = vmatpush1.msk.msra.mxu0 %vm775_vm3, %v763_v44  ;;  %v548_v56 = vpop.permute.xlu0 %547 }
 0x11d   :  { %v554_v57 = vsel %vm508_vm2, %v1904_v46, %v548_v56  ;;  %v550_v58 = vpop.permute.xlu1 %549  ;;  %v731_v60 = vld [vmem:[#allocation2 + $0xf8] sm:$0xff] }
 0x11e   :  { %564 = vst [vmem:[#allocation2 + $0x68] sm:$0x1c] %v554_v57  ;;  %v555_v61 = vsel %vm508_vm2, %v548_v56, %v550_v58  ;;  %v732_v62 = vld [vmem:[#allocation2 + $0x100] sm:$0xff] }
 0x11f   :  { %565 = vst [vmem:[#allocation2 + $0x130] sm:$0x1c] %v555_v61  ;;  %1049 = vmatprep.subr.mxu1 %v732_v62 }
 0x120   :  { %1050 = vmatpush1.msra.mxu1 %v731_v60  ;;  %v633_v0 = vpop.permute.xlu0 %632 }
 0x121   :  { %v639_v31 = vsel %vm593_vm4, %v1910_v22, %v633_v0  ;;  %v635_v47 = vpop.permute.xlu1 %634  ;;  %1289 = vmatmul.mubr.msk.f32.vlgmr.msra.gmra.mxu1 %vm771_vm9, %v1816_v2 }
 0x122   :  { %649 = vst [vmem:[#allocation2 + $0x68] sm:$0xe0] %v639_v31  ;;  %v640_v1 = vsel %vm593_vm4, %v633_v0, %v635_v47 }
 0x123   :  { %650 = vst [vmem:[#allocation2 + $0x130] sm:$0xe0] %v640_v1 }
 0x124   :  { %v205_v5 = vpop.permute.xlu0 %204 }
 0x125   :  { %v211_v39 = vsel %vm160_vm5, %v1918_v29, %v205_v5  ;;  %v207_v6 = vpop.permute.xlu1 %206  ;;  %v1968_v29 = vshrl.u32 %v1173_v28, 7 }
 0x126   :  { %221 = vst [vmem:[#allocation2 + $0x8] ss:$124 sps:$4 sm:$0xc1] %v211_v39   ;;  %v212_v7 = vsel %vm160_vm5, %v205_v5, %v207_v6 }
 0x127   :  { %222 = vst [vmem:[#allocation2 + $0x98] ss:$116 sps:$4 sm:$0xc1] %v212_v7   ;;  %v1179_v59 = vsub.s32 1, %v1968_v29  ;;  %v1175_v33 = vsub.s32 0, %v1968_v29  ;;  %v1183_v36 = vsub.s32 2, %v1968_v29 }
 0x128   :  { %v295_v55 = vpop.permute.xlu0 %294  ;;  %v1187_v43 = vsub.s32 3, %v1968_v29  ;;  %v1191_v54 = vsub.s32 4, %v1968_v29  ;;  %vm1266_vm10 = vcmp.eq.s32.totalorder %v1968_v29, 2  ;;  %vm1265_vm11 = vcmp.eq.s32.totalorder %v1968_v29, 1 }
 0x129   :  { %v301_v3 = vsel %vm255_vm6, %v1924_v12, %v295_v55  ;;  %v297_v63 = vpop.permute.xlu1 %296  ;;  %v753_v9 = vld [vmem:[#allocation2 + $0x68] sm:$0xff]  ;;  %v1180_v34 = vrot.slane %v1171_v32, %v1179_v59  ;;  %v1176_v40 = vrot.slane %v1171_v32, %v1175_v33  ;;  %v1184_v42 = vrot.slane %v1171_v32, %v1183_v36 }
 0x12a   :  { %311 = vst [vmem:[#allocation2 + $0x8] sm:$0xe] %v301_v3  ;;  %v302_v10 = vsel %vm255_vm6, %v295_v55, %v297_v63  ;;  %v754_v8 = vld [vmem:[#allocation2 + $0x130] sm:$0xff]  ;;  %v1188_v14 = vrot.slane %v1171_v32, %v1187_v43  ;;  %v1192_v61 = vrot.slane %v1171_v32, %v1191_v54  ;;  %vm1264_vm12 = vcmp.eq.s32.totalorder %v1968_v29, 0 }
 0x12b   :  { %312 = vst [vmem:[#allocation2 + $0x98] sm:$0xe] %v302_v10  ;;  %1116 = vmatprep.subr.mxu0 %v754_v8 }
 0x12c   :  { %1117 = vmatpush1.msra.mxu0 %v753_v9  ;;  %v368_v11 = vpop.permute.xlu0 %367 }
 0x12d   :  { %v374_v13 = vsel %vm334_vm7, %v1932_v4, %v368_v11  ;;  %v370_v16 = vpop.permute.xlu1 %369 }
 0x12e   :  { %384 = vst [vmem:[#allocation2 + $0x8] sm:$0x70] %v374_v13  ;;  %v375_v46 = vsel %vm334_vm7, %v368_v11, %v370_v16 }
 0x12f   :  { %385 = vst [vmem:[#allocation2 + $0x98] sm:$0x70] %v375_v46 }
 0x130   :  { %v115_v17 = vpop.permute.xlu0 %114 }
 0x131   :  { %v121_v18 = vsel %vm75_vm8, %v113_v27, %v115_v17  ;;  %v117_v20 = vpop.permute.xlu1 %116 }
 0x132   :  { %131 = vst [vmem:[#allocation2 + $0x80] sm:$0x38] %v121_v18  ;;  %v122_v21 = vsel %vm75_vm8, %v115_v17, %v117_v20 }
 0x133   :  { %132 = vst [vmem:[#allocation2 + $0x108] sm:$0x38] %v122_v21 }
 0x135   :  { %v743_v22 = vld [vmem:[#allocation2 + $0x8] sm:$0xff] }
 0x136   :  { %v744_v23 = vld [vmem:[#allocation2 + $0x98] sm:$0xff] }
 0x137   :  { %1118 = vmatprep.subr.mxu0 %v744_v23 }
 0x138   :  { %1119 = vmatpush1.msra.mxu0 %v743_v22 }
 0x139   :  { %v733_v25 = vld [vmem:[#allocation2 + $0x80] sm:$0xff] }
 0x13a   :  { %v734_v26 = vld [vmem:[#allocation2 + $0x108] sm:$0xff] }
 0x13b   :  { %1120 = vmatprep.subr.mxu0 %v734_v26 }
 0x13c   :  { %1121 = vmatpush1.msra.mxu0 %v733_v25 }
 0x13d   :  { %1292 = vmatmul.mubr.msk.f32.vlgmr.msra.gmra.mxu0 %vm771_vm9, %v1816_v2  ;;  %v1970_v19 = vpop.permute.xlu0 %768 }
 0x17c   :  { %v872_v52 = vpop.f32.mrf.mxu0 }
 0x17d   :  { %v873_v24 = vadd.f32 %v872_v52, %v1970_v19 }
 0x17e   :  { %v874_v30 = vpop.f32.mrf.mxu0 }
 0x17f   :  { %v875_v12 = vadd.f32 %v874_v30, %v1970_v19  ;;  %v1161_v38 = vmax.f32 %v873_v24, 0.0 }
 0x181   :  { %v1162_v37 = vmax.f32 %v875_v12, 0.0  ;;  %v1198_v49 = vmul.f32 %v1176_v40, %v1161_v38 }
 0x183   :  { %v1199_v45 = vmul.f32 %v1180_v34, %v1162_v37  ;;  %v1226_v51 = vmul.f32 %v1198_v49, %v1198_v49 }
 0x185   :  { %v1227_v15 = vmul.f32 %v1199_v45, %v1199_v45 }
 0x187   :  { %v1231_v56 = vadd.f32 %v1227_v15, %v1226_v51 }
 0x194   :  { %v943_v2 = vpop.f32.mrf.mxu1 }
 0x195   :  { %v944_v4 = vadd.f32 %v943_v2, %v1970_v19 }
 0x196   :  { %v945_v41 = vpop.f32.mrf.mxu1 }
 0x197   :  { %v1163_v48 = vmax.f32 %v944_v4, 0.0  ;;  %v946_v27 = vadd.f32 %v945_v41, %v1970_v19 }
 0x199   :  { %v1200_v50 = vmul.f32 %v1184_v42, %v1163_v48  ;;  %v1164_v35 = vmax.f32 %v946_v27, 0.0 }
 0x19b   :  { %v1228_v44 = vmul.f32 %v1200_v50, %v1200_v50  ;;  %v1201_v53 = vmul.f32 %v1188_v14, %v1164_v35 }
 0x19d   :  { %v1229_v58 = vmul.f32 %v1201_v53, %v1201_v53  ;;  %v1232_v62 = vadd.f32 %v1231_v56, %v1228_v44 }
 0x19f   :  { %v1233_v47 = vadd.f32 %v1232_v62, %v1229_v58 }
 0x1cc   :  { %v1014_v57 = vpop.f32.mrf.mxu0 }
 0x1cd   :  { %v1015_v60 = vadd.f32 %v1014_v57, %v1970_v19 }
 0x1ce   :  { %v1016_v39 = vpop.f32.mrf.mxu0 }
 0x1cf   :  { %v1165_v0 = vmax.f32 %v1015_v60, 0.0  ;;  %v1017_v7 = vadd.f32 %v1016_v39, %v1970_v19 }
 0x1d1   :  { %v1202_v31 = vmul.f32 %v1192_v61, %v1165_v0  ;;  %v1166_v63 = vmax.f32 %v1017_v7, 0.0 }
 0x1d3   :  { %v1230_v1 = vmul.f32 %v1202_v31, %v1202_v31  ;;  %v1203_v8 = vmul.f32 %v1176_v40, %v1166_v63 }
 0x1d5   :  { %v1234_v5 = vadd.f32 %v1233_v47, %v1230_v1  ;;  %v1208_v16 = vmul.f32 %v1203_v8, %v1198_v49  ;;  %v1244_v20 = vmul.f32 %v1203_v8, %v1203_v8 }
 0x1d7   :  { %1235 = vadd.xlane.f32.xlu0 %v1234_v5 }
 0x1e1   :  { %v1085_v6 = vpop.f32.mrf.mxu1 }
 0x1e2   :  { %v1086_v55 = vadd.f32 %v1085_v6, %v1970_v19 }
 0x1e3   :  { %v1087_v3 = vpop.f32.mrf.mxu1 }
 0x1e4   :  { %v1167_v9 = vmax.f32 %v1086_v55, 0.0  ;;  %v1088_v10 = vadd.f32 %v1087_v3, %v1970_v19 }
 0x1e6   :  { %v1204_v11 = vmul.f32 %v1180_v34, %v1167_v9  ;;  %v1168_v13 = vmax.f32 %v1088_v10, 0.0 }
 0x1e8   :  { %v1209_v46 = vmul.f32 %v1204_v11, %v1199_v45  ;;  %v1205_v17 = vmul.f32 %v1184_v42, %v1168_v13  ;;  %v1245_v21 = vmul.f32 %v1204_v11, %v1204_v11 }
 0x1ea   :  { %v1213_v25 = vadd.f32 %v1209_v46, %v1208_v16  ;;  %v1210_v26 = vmul.f32 %v1205_v17, %v1200_v50  ;;  %v1249_v30 = vadd.f32 %v1245_v21, %v1244_v20  ;;  %v1246_v59 = vmul.f32 %v1205_v17, %v1205_v17 }
 0x1ec   :  { %v1214_v34 = vadd.f32 %v1213_v25, %v1210_v26  ;;  %v1250_v36 = vadd.f32 %v1249_v30, %v1246_v59 }
 0x1fd   :  { %v1156_v18 = vpop.f32.mrf.mxu0 }
 0x1fe   :  { %v1157_v22 = vadd.f32 %v1156_v18, %v1970_v19 }
 0x1ff   :  { %v1158_v23 = vpop.f32.mrf.mxu0 }
 0x200   :  { %v1169_v28 = vmax.f32 %v1157_v22, 0.0  ;;  %v1159_v52 = vadd.f32 %v1158_v23, %v1970_v19 }
 0x202   :  { %v1206_v12 = vmul.f32 %v1188_v14, %v1169_v28  ;;  %v1170_v32 = vmax.f32 %v1159_v52, 0.0 }
 0x204   :  { %v1211_v24 = vmul.f32 %v1206_v12, %v1201_v53  ;;  %v1247_v33 = vmul.f32 %v1206_v12, %v1206_v12  ;;  %v1207_v2 = vmul.f32 %v1192_v61, %v1170_v32 }
 0x206   :  { %v1212_v37 = vmul.f32 %v1207_v2, %v1202_v31  ;;  %v1215_v4 = vadd.f32 %v1214_v34, %v1211_v24  ;;  %v1248_v38 = vmul.f32 %v1207_v2, %v1207_v2  ;;  %v1251_v41 = vadd.f32 %v1250_v36, %v1247_v33 }
 0x208   :  { %v1216_v40 = vadd.f32 %v1215_v4, %v1212_v37  ;;  %v1252_v42 = vadd.f32 %v1251_v41, %v1248_v38 }
 0x20a   :  { %1217 = vadd.xlane.f32.xlu1 %v1216_v40 }
 0x20e   :  { %1253 = vadd.xlane.f32.xlu1 %v1252_v42 }
 0x260   :  { %v1236_v43 = vpop.xlane.xlu0 %1235 }
 0x261   :  { %v1237_v45 = vrot.slane %v1236_v43, 4 }
 0x263   :  { %v1238_v19 = vadd.f32 %v1237_v45, %v1236_v43 }
 0x265   :  { %v1239_v48 = vrot.slane %v1238_v19, 2 }
 0x267   :  { %v1240_v15 = vadd.f32 %v1239_v48, %v1238_v19 }
 0x269   :  { %v1241_v54 = vrot.slane %v1240_v15, 1 }
 0x26b   :  { %v1242_v61 = vadd.f32 %v1241_v54, %v1240_v15 }
 0x293   :  { %v1218_v27 = vpop.xlane.xlu1 %1217 }
 0x294   :  { %v1219_v49 = vrot.slane %v1218_v27, 4 }
 0x296   :  { %v1220_v14 = vadd.f32 %v1219_v49, %v1218_v27 }
 0x297   :  { %v1254_v50 = vpop.xlane.xlu1 %1253 }
 0x298   :  { %v1221_v35 = vrot.slane %v1220_v14, 2  ;;  %v1255_v51 = vrot.slane %v1254_v50, 4 }
 0x29a   :  { %v1256_v44 = vadd.f32 %v1255_v51, %v1254_v50  ;;  %v1222_v53 = vadd.f32 %v1221_v35, %v1220_v14 }
 0x29c   :  { %v1257_v56 = vrot.slane %v1256_v44, 2  ;;  %v1223_v57 = vrot.slane %v1222_v53, 1 }
 0x29e   :  { %v1258_v58 = vadd.f32 %v1257_v56, %v1256_v44  ;;  %v1224_v60 = vadd.f32 %v1223_v57, %v1222_v53 }
 0x2a0   :  { %1293 = vpush %v1224_v60  ;;  %v1259_v62 = vrot.slane %v1258_v58, 1 }
 0x2a1   :  { %1295 = vpush %v1242_v61 }
 0x2a2   :  { %v1260_v0 = vadd.f32 %v1259_v62, %v1258_v58 }
 0x2a4   :  { %1297 = vpush %v1260_v0 }
 0x2d1   :  { %s1294_s4 = spop %1293 }
 0x2d2   :  { %s1296_s15 = spop %1295  ;;  %v1271_v5 = vstv %s1294_s4 }
 0x2d3   :  { %v1269_v47 = vstv %s1296_s15 }
 0x2d5   :  { %s1298_s13 = spop %1297 }
 0x2d6   :  { %v1267_v31 = vstv %s1298_s13 }
 0x2d7   :  { %v1268_v1 = vsel %vm1266_vm10, %v1267_v31, 0.0 }
 0x2d8   :  { %v1270_v39 = vsel %vm1265_vm11, %v1269_v47, %v1268_v1 }
 0x2d9   :  { %v1272_v6 = vsel %vm1264_vm12, %v1271_v5, %v1270_v39 }
 0x2da   :  { %1273 = vst [vmem:[%s2001_s5] sm:$0xff] %v1272_v6 }

</bundles_post_ra>
